<compile_context>
chip_gen: v5e
topology: v5e:2x2
jax: 0.10.0
libtpu: 0.0.40
codegen_flags: <defaults>
</compile_context>

<pallas_src>
import functools

import jax
import jax.numpy as jnp
from jax.experimental import pallas as pl
from jax.experimental.pallas import tpu as pltpu

SIDE_W = 8             # packed per-token side channel width (label, target, mask, pad)
LN_EPS = 1e-5          # nn.LayerNorm default eps
NEG_BIG = -1e30        # bias for padded vocab lanes (vanishes under max-subtracted lse)
_INV_SQRT2 = 0.7071067811865476

# flipped off (with a one-time fallback recompile) if this jax/libtpu rejects
# pipeline_mode=pl.Buffered(1) on resident weight BlockSpecs.
_WEIGHT_PIPELINE_MODE_OK = True


def _gelu_exact(x):
    # matches torch.nn.GELU() (exact erf form)
    # TODO(synk): jax.nn.gelu(approximate=True) would move GELU to the EUP tanh path
    # and off the VALU slot, but it changes the module's numerics slightly.
    return 0.5 * x * (1.0 + jax.lax.erf(x * _INV_SQRT2))


def _round_up(x, m):
    return (x + m - 1) // m * m


def _tpu_config():
    """Returns (parallel core split for the leading grid axis, vmem_limit_bytes)."""
    cores = 1
    cap = 128 * 1024 * 1024
    try:
        kind = jax.devices()[0].device_kind.lower()
        if "v7" in kind:
            cores, cap = 2, 64 * 1024 * 1024
        elif ("v4" in kind) or ("v5p" in kind):
            cores = 2  # megacore
    except Exception:
        pass
    try:
        cap = int(pltpu.get_tpu_info().vmem_capacity_bytes)
    except Exception:
        pass
    if cap >= 128 * 1024 * 1024:
        limit = 104 * 1024 * 1024                      # v5e / v6e: ~24 MiB headroom
    else:
        limit = max(cap - 16 * 1024 * 1024, 32 * 1024 * 1024)   # v7x: ~48 MiB
    return cores, limit


def _pick_tm(d_pad, h_pad, v_pad, itemsize, vmem_limit):
    """Largest power-of-two row tile whose working set fits the VMEM budget."""
    weight_bytes = d_pad * (d_pad + h_pad + v_pad) * itemsize   # single-buffered weights
    budget = vmem_limit - weight_bytes - (4 << 20)
    per_row = (2 * (d_pad * itemsize + SIDE_W * 4)              # double-buffered inputs
               + 4 * (2 * (d_pad + h_pad) + v_pad + 128))       # f32 intermediates (margin)
    tm = 512
    while tm > 8 and tm * per_row > budget:
        tm //= 2
    return max(tm, 8)


def mcm_kernel(side_ref, x_ref,
               w13_ref, b13_ref, ln_w_ref, ln_b_ref,
               w2_ref, b2_ref, w4_ref, b4_ref,
               out_ref,
               acc_ref,
               *, d_true, d_pad):
    i = pl.program_id(1)

    @pl.when(i == 0)
    def _():
        acc_ref[...] = jnp.zeros_like(acc_ref)

    side = side_ref[...]                            # (TM, 8) f32
    labels = side[:, 0:1].astype(jnp.int32)         # (TM, 1) gate labels
    targets = side[:, 1:2]                          # (TM, 1) regression targets
    msk = side[:, 2:3]                              # (TM, 1) 1.0 where masked

    x = x_ref[...]                                  # (TM, D_pad), compute dtype

    # ---- fused first layers of both heads: x @ [w1 | w3] (one MXU pass) ----
    h_all = jnp.dot(x, w13_ref[...], preferred_element_type=jnp.float32) + b13_ref[...]
    h_all = _gelu_exact(h_all)                      # padded lanes stay exactly 0
    h = h_all[:, :d_pad]                            # gate head hidden (lane-aligned slice)
    h2 = h_all[:, d_pad:]                           # param head hidden

    # ---- LayerNorm over the true d_model lanes (padding-corrected statistics) ----
    mu = jnp.sum(h, axis=-1, keepdims=True) * (1.0 / d_true)
    ssq = jnp.sum(jnp.square(h - mu), axis=-1, keepdims=True)
    if d_pad != d_true:                             # remove padded lanes' (0 - mu)^2 terms
        ssq = ssq - (d_pad - d_true) * (mu * mu)
    var = ssq * (1.0 / d_true)
    hn = (h - mu) * jax.lax.rsqrt(var + LN_EPS)
    hn = hn * ln_w_ref[...] + ln_b_ref[...]         # padded lanes -> 0
    logits = (jnp.dot(hn.astype(w2_ref.dtype), w2_ref[...],
                      preferred_element_type=jnp.float32) + b2_ref[...])   # (TM, V_pad) f32

    # ---- cross entropy over masked tokens, ignore_index=0 ----
    mx = jnp.max(logits, axis=-1, keepdims=True)
    lse = mx + jnp.log(jnp.sum(jnp.exp(logits - mx), axis=-1, keepdims=True))
    col = jax.lax.broadcasted_iota(jnp.int32, logits.shape, 1)
    logit_true = jnp.sum(jnp.where(col == labels, logits, 0.0), axis=-1, keepdims=True)
    ce = lse - logit_true
    w_gate = msk * (labels != 0).astype(jnp.float32)

    # ---- param head: Linear(->1) ----
    p = jnp.sum(h2 * w4_ref[...], axis=-1, keepdims=True) + b4_ref[0]       # (TM, 1)
    se = jnp.square(p - targets)

    # ---- per-row partial sums; cross-sublane reduction deferred to the epilogue ----
    acc_ref[:, 0:1] += ce * w_gate
    acc_ref[:, 1:2] += w_gate
    acc_ref[:, 2:3] += se * msk
    acc_ref[:, 3:4] += msk

    # write this core's (8, 128) output block once, at its last step
    @pl.when(i == pl.num_programs(1) - 1)
    def _():
        s = jnp.sum(acc_ref[...], axis=0, keepdims=True)        # (1, 4)
        lane = jax.lax.broadcasted_iota(jnp.int32, out_ref.shape, 1)
        sub = jax.lax.broadcasted_iota(jnp.int32, out_ref.shape, 0)
        row = jnp.where(lane == 0, s[:, 0:1],
              jnp.where(lane == 1, s[:, 1:2],
              jnp.where(lane == 2, s[:, 2:3],
              jnp.where(lane == 3, s[:, 3:4], 0.0))))
        out_ref[...] = jnp.where(sub == 0, row, 0.0)


def init_params(key, d_model, vocab_size):
    d_half = d_model // 2
    ks = jax.random.split(key, 8)
    scale = 1.0 / jnp.sqrt(jnp.float32(d_model))
    w1 = jax.random.normal(ks[0], (d_model, d_model), jnp.float32) * scale
    b1 = jax.random.normal(ks[1], (d_model,), jnp.float32) * 0.02
    ln_w = jnp.ones((d_model,), jnp.float32)    # nn.LayerNorm init
    ln_b = jnp.zeros((d_model,), jnp.float32)
    w2 = jax.random.normal(ks[2], (d_model, vocab_size), jnp.float32) * scale
    b2 = jax.random.normal(ks[3], (vocab_size,), jnp.float32) * 0.02
    w3 = jax.random.normal(ks[4], (d_model, d_half), jnp.float32) * scale
    b3 = jax.random.normal(ks[5], (d_half,), jnp.float32) * 0.02
    w4 = jax.random.normal(ks[6], (d_half,), jnp.float32) * (1.0 / jnp.sqrt(jnp.float32(d_half)))
    b4 = jax.random.normal(ks[7], (), jnp.float32) * 0.02
    return (w1, b1, ln_w, ln_b, w2, b2, w3, b3, w4, b4)


@functools.partial(jax.jit, static_argnames=("tm", "compute_dtype", "core_split",
                                              "vmem_limit_bytes", "single_buffer_weights"))
def _mcm_loss(hidden_states, original_gates, original_params, mask, params, *,
              tm, compute_dtype, core_split, vmem_limit_bytes, single_buffer_weights):
    B, S, D = hidden_states.shape
    w1, b1, ln_w, ln_b, w2, b2, w3, b3, w4, b4 = params
    V = w2.shape[1]
    H = w3.shape[1]
    assert V < (1 << 24), "labels round-trip through f32 in the packed side channel"

    D_pad = _round_up(D, 128)
    H_pad = _round_up(H, 128)
    V_pad = _round_up(V, 128)

    N = B * S
    tm_eff = min(tm, _round_up(max(pl.cdiv(N, core_split), 8), 8))
    N_pad = _round_up(N, core_split * tm_eff)
    steps = N_pad // (core_split * tm_eff)

    cdt = compute_dtype
    x = hidden_states.reshape(N, D).astype(cdt)
    x = jnp.pad(x, ((0, N_pad - N), (0, D_pad - D)))

    # pack per-token side channels (label, target, mask) into a single lane group
    side = jnp.stack([original_gates.reshape(N).astype(jnp.float32),
                      original_params.reshape(N).astype(jnp.float32),
                      mask.reshape(N).astype(jnp.float32)], axis=1)          # (N, 3)
    side = jnp.pad(side, ((0, N_pad - N), (0, SIDE_W - 3)))

    # fused first-layer weight [w1 | w3] / bias, zero-padded to lane-dense shapes
    w13 = jnp.zeros((D_pad, D_pad + H_pad), cdt)
    w13 = w13.at[:D, :D].set(w1.astype(cdt)).at[:D, D_pad:D_pad + H].set(w3.astype(cdt))
    b13 = jnp.zeros((1, D_pad + H_pad), jnp.float32)
    b13 = b13.at[0, :D].set(b1.astype(jnp.float32)).at[0, D_pad:D_pad + H].set(b3.astype(jnp.float32))

    ln_wp = jnp.pad(ln_w.astype(jnp.float32), (0, D_pad - D)).reshape(1, D_pad)
    ln_bp = jnp.pad(ln_b.astype(jnp.float32), (0, D_pad - D)).reshape(1, D_pad)
    w2p = jnp.zeros((D_pad, V_pad), cdt).at[:D, :V].set(w2.astype(cdt))
    b2p = jnp.full((1, V_pad), NEG_BIG, jnp.float32).at[0, :V].set(b2.astype(jnp.float32))
    w4p = jnp.pad(w4.astype(jnp.float32), (0, H_pad - H)).reshape(1, H_pad)
    b4s = b4.astype(jnp.float32).reshape(1)

    def token_spec(width):
        return pl.BlockSpec((tm_eff, width), lambda c, i: (c * steps + i, 0))

    def resident_spec(shape):
        # constant index map -> block stays resident; single-buffer to halve VMEM
        if single_buffer_weights:
            return pl.BlockSpec(shape, lambda c, i: (0,) * len(shape),
                                pipeline_mode=pl.Buffered(1))
        return pl.BlockSpec(shape, lambda c, i: (0,) * len(shape))

    itemsize = jnp.dtype(cdt).itemsize
    cost = pl.CostEstimate(
        flops=2 * N_pad * (D_pad * (D_pad + H_pad + V_pad) + H_pad),
        transcendentals=N_pad * (D_pad + H_pad + V_pad),
        bytes_accessed=(N_pad * D_pad * itemsize + N_pad * SIDE_W * 4
                        + D_pad * (D_pad + H_pad + V_pad) * itemsize
                        + (3 * D_pad + 2 * H_pad + V_pad + 1) * 4
                        + core_split * 8 * 128 * 4))

    # TODO(synk): for very large d_model on v7x (64 MiB VMEM), add a K grid axis that
    # streams (tk, D_pad + H_pad + V_pad) weight slabs and accumulates h/logits in
    # VMEM scratch instead of keeping the full fused weights resident.
    out = pl.pallas_call(
        functools.partial(mcm_kernel, d_true=D, d_pad=D_pad),
        out_shape=jax.ShapeDtypeStruct((core_split * 8, 128), jnp.float32),
        grid=(core_split, steps),
        in_specs=[
            token_spec(SIDE_W),                                   # packed label/target/mask
            token_spec(D_pad),                                    # hidden tokens
            resident_spec((D_pad, D_pad + H_pad)),                # fused [w1 | w3]
            resident_spec((1, D_pad + H_pad)),                    # fused [b1 | b3]
            resident_spec((1, D_pad)), resident_spec((1, D_pad)), # layernorm scale / shift
            resident_spec((D_pad, V_pad)), resident_spec((1, V_pad)),  # gate head linear 2
            resident_spec((1, H_pad)),                            # param head linear 2 weight
            pl.BlockSpec(memory_space=pltpu.MemorySpace.SMEM),    # param head linear 2 bias
        ],
        out_specs=pl.BlockSpec((8, 128), lambda c, i: (c, 0)),
        scratch_shapes=[pltpu.VMEM((tm_eff, 4), jnp.float32)],
        compiler_params=pltpu.CompilerParams(
            # TODO(synk): switch the leading axis to pltpu.CORE_PARALLEL if xprof shows
            # the second v7x TensorCore idle under the plain "parallel" semantics.
            dimension_semantics=("parallel", "arbitrary"),
            vmem_limit_bytes=vmem_limit_bytes),
        cost_estimate=cost,
    )(side, x, w13, b13, ln_wp, ln_bp, w2p, b2p, w4p, b4s)

    parts = out.reshape(core_split, 8, 128)[:, 0, :4]   # per-core partial sums
    sums = jnp.sum(parts, axis=0)
    gate_loss = sums[0] / sums[1]           # mean CE over masked tokens with label != 0
    param_loss = sums[2] / sums[3]          # mean squared error over masked tokens
    return gate_loss + param_loss


def masked_circuit_modeling_loss(hidden_states, original_gates, original_params, mask,
                                 params, *, tm=None, compute_dtype=jnp.bfloat16):
    global _WEIGHT_PIPELINE_MODE_OK
    core_split, vmem_limit = _tpu_config()

    D = hidden_states.shape[-1]
    V = params[4].shape[1]
    H = params[6].shape[1]
    D_pad, H_pad, V_pad = _round_up(D, 128), _round_up(H, 128), _round_up(V, 128)
    if tm is None:
        tm = _pick_tm(D_pad, H_pad, V_pad, jnp.dtype(compute_dtype).itemsize, vmem_limit)

    kwargs = dict(tm=tm, compute_dtype=compute_dtype, core_split=core_split,
                  vmem_limit_bytes=vmem_limit)
    if _WEIGHT_PIPELINE_MODE_OK:
        try:
            return _mcm_loss(hidden_states, original_gates, original_params, mask, params,
                             single_buffer_weights=True, **kwargs)
        except Exception:
            _WEIGHT_PIPELINE_MODE_OK = False   # fall back to default double buffering
    return _mcm_loss(hidden_states, original_gates, original_params, mask, params,
                     single_buffer_weights=False, **kwargs)


def reference_loss(hidden_states, original_gates, original_params, mask, params):
    """Pure-JAX reference mirroring the PyTorch forward."""
    w1, b1, ln_w, ln_b, w2, b2, w3, b3, w4, b4 = params
    x = hidden_states.astype(jnp.float32)
    h = _gelu_exact(x @ w1 + b1)
    mu = jnp.mean(h, axis=-1, keepdims=True)
    var = jnp.mean(jnp.square(h - mu), axis=-1, keepdims=True)
    hn = (h - mu) * jax.lax.rsqrt(var + LN_EPS) * ln_w + ln_b
    logits = hn @ w2 + b2                                  # (B, S, V)
    lse = jax.scipy.special.logsumexp(logits, axis=-1)
    logit_true = jnp.take_along_axis(logits, original_gates[..., None], axis=-1)[..., 0]
    ce = lse - logit_true
    w_gate = mask.astype(jnp.float32) * (original_gates != 0).astype(jnp.float32)
    gate_loss = jnp.sum(ce * w_gate) / jnp.sum(w_gate)

    h2 = _gelu_exact(x @ w3 + b3)
    p = h2 @ w4 + b4                                       # (B, S)
    mf = mask.astype(jnp.float32)
    param_loss = jnp.sum(jnp.square(p - original_params) * mf) / jnp.sum(mf)
    return gate_loss + param_loss


if __name__ == "__main__":
    B, S, D, V = 2, 8, 32, 10
    key = jax.random.PRNGKey(0)
    k_h, k_g, k_p, k_params = jax.random.split(key, 4)

    hidden_states = jax.random.normal(k_h, (B, S, D), jnp.float32)
    original_gates = jax.random.randint(k_g, (B, S), 0, V, jnp.int32)
    # guarantee some masked positions carry non-zero labels (ignore_index=0)
    original_gates = original_gates.at[:, 0].set(3).at[:, 2].set(7)
    original_params = jax.random.uniform(k_p, (B, S), jnp.float32, -1.0, 1.0)
    # deterministic mask (stand-in for create_masked_input's random masking)
    mask = (jnp.arange(S) % 2 == 0)[None, :].repeat(B, axis=0)

    params = init_params(k_params, D, V)

    ref = reference_loss(hidden_states, original_gates, original_params, mask, params)

    # default path: bf16 MXU operands, f32 LayerNorm/softmax/accumulation
    loss = masked_circuit_modeling_loss(hidden_states, original_gates,
                                        original_params, mask, params)
    jax.block_until_ready(loss)
    assert jnp.allclose(loss, ref, rtol=5e-2, atol=5e-2), (loss, ref)

    # f32-operand path for a tight numerical check
    loss_f32 = masked_circuit_modeling_loss(hidden_states, original_gates,
                                            original_params, mask, params,
                                            compute_dtype=jnp.float32)
    jax.block_until_ready(loss_f32)
    assert jnp.allclose(loss_f32, ref, rtol=1e-4, atol=1e-4), (loss_f32, ref)

    print("KERNEL_OK")
</pallas_src>

<mosaic_0001>
module attributes {stable_mosaic.version = 11 : i64} {
  func.func @mcm_kernel(%arg0: i32, %arg1: i32, %arg2: memref<16x8xf32, #tpu.memory_space<vmem>>, %arg3: memref<16x128xbf16, #tpu.memory_space<vmem>>, %arg4: memref<128x256xbf16, #tpu.memory_space<vmem>>, %arg5: memref<1x256xf32, #tpu.memory_space<vmem>>, %arg6: memref<1x128xf32, #tpu.memory_space<vmem>>, %arg7: memref<1x128xf32, #tpu.memory_space<vmem>>, %arg8: memref<128x128xbf16, #tpu.memory_space<vmem>>, %arg9: memref<1x128xf32, #tpu.memory_space<vmem>>, %arg10: memref<1x128xf32, #tpu.memory_space<vmem>>, %arg11: memref<1xf32, #tpu.memory_space<smem>>, %arg12: memref<8x128xf32, #tpu.memory_space<vmem>>, %arg13: memref<16x4xf32, #tpu.memory_space<vmem>>) attributes {dimension_semantics = [#tpu.dimension_semantics<parallel>, #tpu.dimension_semantics<arbitrary>], iteration_bounds = array<i64: 1, 1>, scalar_prefetch = 0 : i64, scratch_operands = 1 : i64, tpu.core_type = #tpu.core_type<tc>, window_params = [{transform_indices = @transform_0, window_bounds = array<i64: 16, 8>}, {transform_indices = @transform_1, window_bounds = array<i64: 16, 128>}, {pipeline_mode = #tpu.pipeline_mode<synchronous>, transform_indices = @transform_2, window_bounds = array<i64: 128, 256>}, {pipeline_mode = #tpu.pipeline_mode<synchronous>, transform_indices = @transform_3, window_bounds = array<i64: 1, 256>}, {pipeline_mode = #tpu.pipeline_mode<synchronous>, transform_indices = @transform_4, window_bounds = array<i64: 1, 128>}, {pipeline_mode = #tpu.pipeline_mode<synchronous>, transform_indices = @transform_5, window_bounds = array<i64: 1, 128>}, {pipeline_mode = #tpu.pipeline_mode<synchronous>, transform_indices = @transform_6, window_bounds = array<i64: 128, 128>}, {pipeline_mode = #tpu.pipeline_mode<synchronous>, transform_indices = @transform_7, window_bounds = array<i64: 1, 128>}, {pipeline_mode = #tpu.pipeline_mode<synchronous>, transform_indices = @transform_8, window_bounds = array<i64: 1, 128>}, {transform_indices = @transform_9, window_bounds = array<i64: 1>}, {transform_indices = @transform_10, window_bounds = array<i64: 8, 128>}]} {
    %c0_i32 = arith.constant 0 : i32
    %0 = arith.cmpi eq, %arg1, %c0_i32 : i32
    %1 = arith.extui %0 : i1 to i32
    %c0_i32_0 = arith.constant 0 : i32
    %2 = arith.cmpi ne, %1, %c0_i32_0 : i32
    scf.if %2 {
      %cst_50 = arith.constant 0.000000e+00 : f32
      %107 = vector.broadcast %cst_50 : f32 to vector<16x4xf32>
      %c0_51 = arith.constant 0 : index
      %c0_52 = arith.constant 0 : index
      %108 = vector.load %arg13[%c0_51, %c0_52] : memref<16x4xf32, #tpu.memory_space<vmem>>, vector<16x4xf32>
      tpu.vector_store %arg13[%c0_51, %c0_52], %107 {strides = array<i32>} : memref<16x4xf32, #tpu.memory_space<vmem>>, vector<16x4xf32>,
    } else {
    }
    %c0 = arith.constant 0 : index
    %c0_1 = arith.constant 0 : index
    %3 = vector.load %arg2[%c0, %c0_1] : memref<16x8xf32, #tpu.memory_space<vmem>>, vector<16x8xf32>
    %4 = vector.extract_strided_slice %3 {offsets = [0, 0], sizes = [16, 1], strides = [1, 1]} : vector<16x8xf32> to vector<16x1xf32>
    %5 = arith.fptosi %4 : vector<16x1xf32> to vector<16x1xi32>
    %6 = vector.extract_strided_slice %3 {offsets = [0, 1], sizes = [16, 1], strides = [1, 1]} : vector<16x8xf32> to vector<16x1xf32>
    %7 = vector.extract_strided_slice %3 {offsets = [0, 2], sizes = [16, 1], strides = [1, 1]} : vector<16x8xf32> to vector<16x1xf32>
    %c0_2 = arith.constant 0 : index
    %c0_3 = arith.constant 0 : index
    %8 = vector.load %arg3[%c0_2, %c0_3] : memref<16x128xbf16, #tpu.memory_space<vmem>>, vector<16x128xbf16>
    %c0_4 = arith.constant 0 : index
    %c0_5 = arith.constant 0 : index
    %9 = vector.load %arg4[%c0_4, %c0_5] : memref<128x256xbf16, #tpu.memory_space<vmem>>, vector<128x256xbf16>
    %cst = arith.constant dense<0.000000e+00> : vector<16x256xf32>
    %10 = tpu.matmul %8, %9, %cst {dimension_numbers = #tpu.dot_dimension_numbers<[1], [0], [0], [1], [0, 0, 1, 1], [], []>} : vector<16x128xbf16>, vector<128x256xbf16>, vector<16x256xf32> -> vector<16x256xf32>
    %c0_6 = arith.constant 0 : index
    %c0_7 = arith.constant 0 : index
    %11 = vector.load %arg5[%c0_6, %c0_7] : memref<1x256xf32, #tpu.memory_space<vmem>>, vector<1x256xf32>
    %12 = vector.broadcast %11 : vector<1x256xf32> to vector<16x256xf32>
    %13 = arith.addf %10, %12 : vector<16x256xf32>
    %cst_8 = arith.constant 5.000000e-01 : f32
    %14 = vector.broadcast %cst_8 : f32 to vector<16x256xf32>
    %15 = arith.mulf %14, %13 : vector<16x256xf32>
    %cst_9 = arith.constant 0.707106769 : f32
    %16 = vector.broadcast %cst_9 : f32 to vector<16x256xf32>
    %17 = arith.mulf %13, %16 : vector<16x256xf32>
    %18 = math.erf %17 : vector<16x256xf32>
    %cst_10 = arith.constant 1.000000e+00 : f32
    %19 = vector.broadcast %cst_10 : f32 to vector<16x256xf32>
    %20 = arith.addf %19, %18 : vector<16x256xf32>
    %21 = arith.mulf %15, %20 : vector<16x256xf32>
    %22 = vector.extract_strided_slice %21 {offsets = [0, 0], sizes = [16, 128], strides = [1, 1]} : vector<16x256xf32> to vector<16x128xf32>
    %23 = vector.extract_strided_slice %21 {offsets = [0, 128], sizes = [16, 128], strides = [1, 1]} : vector<16x256xf32> to vector<16x128xf32>
    %cst_11 = arith.constant dense<0.000000e+00> : vector<16xf32>
    %24 = vector.multi_reduction <add>, %22, %cst_11 [1] : vector<16x128xf32> to vector<16xf32>
    %25 = vector.shape_cast %24 : vector<16xf32> to vector<16x1xf32>
    %cst_12 = arith.constant 3.125000e-02 : f32
    %26 = vector.broadcast %cst_12 : f32 to vector<16x1xf32>
    %27 = arith.mulf %25, %26 : vector<16x1xf32>
    %28 = vector.broadcast %27 : vector<16x1xf32> to vector<16x128xf32>
    %29 = arith.subf %22, %28 : vector<16x128xf32>
    %30 = arith.mulf %29, %29 : vector<16x128xf32>
    %cst_13 = arith.constant dense<0.000000e+00> : vector<16xf32>
    %31 = vector.multi_reduction <add>, %30, %cst_13 [1] : vector<16x128xf32> to vector<16xf32>
    %32 = vector.shape_cast %31 : vector<16xf32> to vector<16x1xf32>
    %33 = arith.mulf %27, %27 : vector<16x1xf32>
    %cst_14 = arith.constant 9.600000e+01 : f32
    %34 = vector.broadcast %cst_14 : f32 to vector<16x1xf32>
    %35 = arith.mulf %34, %33 : vector<16x1xf32>
    %36 = arith.subf %32, %35 : vector<16x1xf32>
    %cst_15 = arith.constant 3.125000e-02 : f32
    %37 = vector.broadcast %cst_15 : f32 to vector<16x1xf32>
    %38 = arith.mulf %36, %37 : vector<16x1xf32>
    %39 = vector.broadcast %27 : vector<16x1xf32> to vector<16x128xf32>
    %40 = arith.subf %22, %39 : vector<16x128xf32>
    %cst_16 = arith.constant 9.99999974E-6 : f32
    %41 = vector.broadcast %cst_16 : f32 to vector<16x1xf32>
    %42 = arith.addf %38, %41 : vector<16x1xf32>
    %43 = math.rsqrt %42 : vector<16x1xf32>
    %44 = vector.broadcast %43 : vector<16x1xf32> to vector<16x128xf32>
    %45 = arith.mulf %40, %44 : vector<16x128xf32>
    %c0_17 = arith.constant 0 : index
    %c0_18 = arith.constant 0 : index
    %46 = vector.load %arg6[%c0_17, %c0_18] : memref<1x128xf32, #tpu.memory_space<vmem>>, vector<1x128xf32>
    %47 = vector.broadcast %46 : vector<1x128xf32> to vector<16x128xf32>
    %48 = arith.mulf %45, %47 : vector<16x128xf32>
    %c0_19 = arith.constant 0 : index
    %c0_20 = arith.constant 0 : index
    %49 = vector.load %arg7[%c0_19, %c0_20] : memref<1x128xf32, #tpu.memory_space<vmem>>, vector<1x128xf32>
    %50 = vector.broadcast %49 : vector<1x128xf32> to vector<16x128xf32>
    %51 = arith.addf %48, %50 : vector<16x128xf32>
    %52 = arith.truncf %51 : vector<16x128xf32> to vector<16x128xbf16>
    %c0_21 = arith.constant 0 : index
    %c0_22 = arith.constant 0 : index
    %53 = vector.load %arg8[%c0_21, %c0_22] : memref<128x128xbf16, #tpu.memory_space<vmem>>, vector<128x128xbf16>
    %cst_23 = arith.constant dense<0.000000e+00> : vector<16x128xf32>
    %54 = tpu.matmul %52, %53, %cst_23 {dimension_numbers = #tpu.dot_dimension_numbers<[1], [0], [0], [1], [0, 0, 1, 1], [], []>} : vector<16x128xbf16>, vector<128x128xbf16>, vector<16x128xf32> -> vector<16x128xf32>
    %c0_24 = arith.constant 0 : index
    %c0_25 = arith.constant 0 : index
    %55 = vector.load %arg9[%c0_24, %c0_25] : memref<1x128xf32, #tpu.memory_space<vmem>>, vector<1x128xf32>
    %56 = vector.broadcast %55 : vector<1x128xf32> to vector<16x128xf32>
    %57 = arith.addf %54, %56 : vector<16x128xf32>
    %cst_26 = arith.constant dense<0xFF800000> : vector<16xf32>
    %58 = vector.multi_reduction <maximumf>, %57, %cst_26 [1] : vector<16x128xf32> to vector<16xf32>
    %59 = vector.shape_cast %58 : vector<16xf32> to vector<16x1xf32>
    %60 = vector.broadcast %59 : vector<16x1xf32> to vector<16x128xf32>
    %61 = arith.subf %57, %60 : vector<16x128xf32>
    %62 = math.exp %61 : vector<16x128xf32>
    %cst_27 = arith.constant dense<0.000000e+00> : vector<16xf32>
    %63 = vector.multi_reduction <add>, %62, %cst_27 [1] : vector<16x128xf32> to vector<16xf32>
    %64 = vector.shape_cast %63 : vector<16xf32> to vector<16x1xf32>
    %65 = math.log %64 : vector<16x1xf32>
    %66 = arith.addf %59, %65 : vector<16x1xf32>
    %67 = tpu.iota {dimensions = array<i32: 1>} : vector<16x128xi32>
    %68 = vector.broadcast %5 : vector<16x1xi32> to vector<16x128xi32>
    %69 = arith.cmpi eq, %67, %68 : vector<16x128xi32>
    %cst_28 = arith.constant 0.000000e+00 : f32
    %70 = vector.broadcast %cst_28 : f32 to vector<16x128xf32>
    %71 = arith.select %69, %57, %70 : vector<16x128xi1>, vector<16x128xf32>
    %cst_29 = arith.constant dense<0.000000e+00> : vector<16xf32>
    %72 = vector.multi_reduction <add>, %71, %cst_29 [1] : vector<16x128xf32> to vector<16xf32>
    %73 = vector.shape_cast %72 : vector<16xf32> to vector<16x1xf32>
    %74 = arith.subf %66, %73 : vector<16x1xf32>
    %c0_i32_30 = arith.constant 0 : i32
    %75 = vector.broadcast %c0_i32_30 : i32 to vector<16x1xi32>
    %76 = arith.cmpi ne, %5, %75 : vector<16x1xi32>
    %77 = arith.extui %76 : vector<16x1xi1> to vector<16x1xi32>
    %78 = arith.sitofp %77 : vector<16x1xi32> to vector<16x1xf32>
    %79 = arith.mulf %7, %78 : vector<16x1xf32>
    %c0_31 = arith.constant 0 : index
    %c0_32 = arith.constant 0 : index
    %80 = vector.load %arg10[%c0_31, %c0_32] : memref<1x128xf32, #tpu.memory_space<vmem>>, vector<1x128xf32>
    %81 = vector.broadcast %80 : vector<1x128xf32> to vector<16x128xf32>
    %82 = arith.mulf %23, %81 : vector<16x128xf32>
    %cst_33 = arith.constant dense<0.000000e+00> : vector<16xf32>
    %83 = vector.multi_reduction <add>, %82, %cst_33 [1] : vector<16x128xf32> to vector<16xf32>
    %84 = vector.shape_cast %83 : vector<16xf32> to vector<16x1xf32>
    %c0_34 = arith.constant 0 : index
    %85 = memref.load %arg11[%c0_34] : memref<1xf32, #tpu.memory_space<smem>>
    %86 = vector.broadcast %85 : f32 to vector<16x1xf32>
    %87 = arith.addf %84, %86 : vector<16x1xf32>
    %88 = arith.subf %87, %6 : vector<16x1xf32>
    %89 = arith.mulf %88, %88 : vector<16x1xf32>
    %c0_35 = arith.constant 0 : index
    %c0_36 = arith.constant 0 : index
    %90 = vector.load %arg13[%c0_35, %c0_36] : memref<16x4xf32, #tpu.memory_space<vmem>>, vector<16x1xf32>
    %91 = arith.mulf %74, %79 : vector<16x1xf32>
    %92 = arith.addf %90, %91 : vector<16x1xf32>
    %c0_37 = arith.constant 0 : index
    %c0_38 = arith.constant 0 : index
    %93 = vector.load %arg13[%c0_37, %c0_38] : memref<16x4xf32, #tpu.memory_space<vmem>>, vector<16x1xf32>
    tpu.vector_store %arg13[%c0_37, %c0_38], %92 {strides = array<i32>} : memref<16x4xf32, #tpu.memory_space<vmem>>, vector<16x1xf32>,
    %c0_39 = arith.constant 0 : index
    %c1 = arith.constant 1 : index
    %94 = vector.load %arg13[%c0_39, %c1] : memref<16x4xf32, #tpu.memory_space<vmem>>, vector<16x1xf32>
    %95 = arith.addf %94, %79 : vector<16x1xf32>
    %c0_40 = arith.constant 0 : index
    %c1_41 = arith.constant 1 : index
    %96 = vector.load %arg13[%c0_40, %c1_41] : memref<16x4xf32, #tpu.memory_space<vmem>>, vector<16x1xf32>
    tpu.vector_store %arg13[%c0_40, %c1_41], %95 {strides = array<i32>} : memref<16x4xf32, #tpu.memory_space<vmem>>, vector<16x1xf32>,
    %c0_42 = arith.constant 0 : index
    %c2 = arith.constant 2 : index
    %97 = vector.load %arg13[%c0_42, %c2] : memref<16x4xf32, #tpu.memory_space<vmem>>, vector<16x1xf32>
    %98 = arith.mulf %89, %7 : vector<16x1xf32>
    %99 = arith.addf %97, %98 : vector<16x1xf32>
    %c0_43 = arith.constant 0 : index
    %c2_44 = arith.constant 2 : index
    %100 = vector.load %arg13[%c0_43, %c2_44] : memref<16x4xf32, #tpu.memory_space<vmem>>, vector<16x1xf32>
    tpu.vector_store %arg13[%c0_43, %c2_44], %99 {strides = array<i32>} : memref<16x4xf32, #tpu.memory_space<vmem>>, vector<16x1xf32>,
    %c0_45 = arith.constant 0 : index
    %c3 = arith.constant 3 : index
    %101 = vector.load %arg13[%c0_45, %c3] : memref<16x4xf32, #tpu.memory_space<vmem>>, vector<16x1xf32>
    %102 = arith.addf %101, %7 : vector<16x1xf32>
    %c0_46 = arith.constant 0 : index
    %c3_47 = arith.constant 3 : index
    %103 = vector.load %arg13[%c0_46, %c3_47] : memref<16x4xf32, #tpu.memory_space<vmem>>, vector<16x1xf32>
    tpu.vector_store %arg13[%c0_46, %c3_47], %102 {strides = array<i32>} : memref<16x4xf32, #tpu.memory_space<vmem>>, vector<16x1xf32>,
    %c0_i32_48 = arith.constant 0 : i32
    %104 = arith.cmpi eq, %arg1, %c0_i32_48 : i32
    %105 = arith.extui %104 : i1 to i32
    %c0_i32_49 = arith.constant 0 : i32
    %106 = arith.cmpi ne, %105, %c0_i32_49 : i32
    scf.if %106 {
      %c0_50 = arith.constant 0 : index
      %c0_51 = arith.constant 0 : index
      %107 = vector.load %arg13[%c0_50, %c0_51] : memref<16x4xf32, #tpu.memory_space<vmem>>, vector<16x4xf32>
      %cst_52 = arith.constant dense<0.000000e+00> : vector<4xf32>
      %108 = vector.multi_reduction <add>, %107, %cst_52 [0] : vector<16x4xf32> to vector<4xf32>
      %109 = vector.shape_cast %108 : vector<4xf32> to vector<1x4xf32>
      %110 = tpu.iota {dimensions = array<i32: 1>} : vector<8x128xi32>
      %111 = tpu.iota {dimensions = array<i32: 0>} : vector<8x128xi32>
      %c0_i32_53 = arith.constant 0 : i32
      %112 = vector.broadcast %c0_i32_53 : i32 to vector<8x128xi32>
      %113 = arith.cmpi eq, %110, %112 : vector<8x128xi32>
      %114 = vector.extract_strided_slice %109 {offsets = [0, 0], sizes = [1, 1], strides = [1, 1]} : vector<1x4xf32> to vector<1x1xf32>
      %c1_i32 = arith.constant 1 : i32
      %115 = vector.broadcast %c1_i32 : i32 to vector<8x128xi32>
      %116 = arith.cmpi eq, %110, %115 : vector<8x128xi32>
      %117 = vector.extract_strided_slice %109 {offsets = [0, 1], sizes = [1, 1], strides = [1, 1]} : vector<1x4xf32> to vector<1x1xf32>
      %c2_i32 = arith.constant 2 : i32
      %118 = vector.broadcast %c2_i32 : i32 to vector<8x128xi32>
      %119 = arith.cmpi eq, %110, %118 : vector<8x128xi32>
      %120 = vector.extract_strided_slice %109 {offsets = [0, 2], sizes = [1, 1], strides = [1, 1]} : vector<1x4xf32> to vector<1x1xf32>
      %c3_i32 = arith.constant 3 : i32
      %121 = vector.broadcast %c3_i32 : i32 to vector<8x128xi32>
      %122 = arith.cmpi eq, %110, %121 : vector<8x128xi32>
      %123 = vector.extract_strided_slice %109 {offsets = [0, 3], sizes = [1, 1], strides = [1, 1]} : vector<1x4xf32> to vector<1x1xf32>
      %cst_54 = arith.constant 0.000000e+00 : f32
      %124 = vector.shape_cast %123 : vector<1x1xf32> to vector<1x1xf32>
      %125 = vector.broadcast %124 : vector<1x1xf32> to vector<8x128xf32>
      %126 = vector.broadcast %cst_54 : f32 to vector<8x128xf32>
      %127 = arith.select %122, %125, %126 : vector<8x128xi1>, vector<8x128xf32>
      %128 = vector.shape_cast %120 : vector<1x1xf32> to vector<1x1xf32>
      %129 = vector.broadcast %128 : vector<1x1xf32> to vector<8x128xf32>
      %130 = arith.select %119, %129, %127 : vector<8x128xi1>, vector<8x128xf32>
      %131 = vector.shape_cast %117 : vector<1x1xf32> to vector<1x1xf32>
      %132 = vector.broadcast %131 : vector<1x1xf32> to vector<8x128xf32>
      %133 = arith.select %116, %132, %130 : vector<8x128xi1>, vector<8x128xf32>
      %134 = vector.shape_cast %114 : vector<1x1xf32> to vector<1x1xf32>
      %135 = vector.broadcast %134 : vector<1x1xf32> to vector<8x128xf32>
      %136 = arith.select %113, %135, %133 : vector<8x128xi1>, vector<8x128xf32>
      %c0_i32_55 = arith.constant 0 : i32
      %137 = vector.broadcast %c0_i32_55 : i32 to vector<8x128xi32>
      %138 = arith.cmpi eq, %111, %137 : vector<8x128xi32>
      %cst_56 = arith.constant 0.000000e+00 : f32
      %139 = vector.broadcast %cst_56 : f32 to vector<8x128xf32>
      %140 = arith.select %138, %136, %139 : vector<8x128xi1>, vector<8x128xf32>
      %c0_57 = arith.constant 0 : index
      %c0_58 = arith.constant 0 : index
      %141 = vector.load %arg12[%c0_57, %c0_58] : memref<8x128xf32, #tpu.memory_space<vmem>>, vector<8x128xf32>
      tpu.vector_store %arg12[%c0_57, %c0_58], %140 {strides = array<i32>} : memref<8x128xf32, #tpu.memory_space<vmem>>, vector<8x128xf32>,
    } else {
    }
    return
  }
  func.func @transform_0(%arg0: i32, %arg1: i32) -> (i32, i32) {
    %c1_i32 = arith.constant 1 : i32
    %0 = arith.muli %arg0, %c1_i32 : i32
    %1 = arith.addi %0, %arg1 : i32
    %c0_i32 = arith.constant 0 : i32
    %c0_i32_0 = arith.constant 0 : i32
    return %1, %c0_i32 : i32, i32
  }
  func.func @transform_1(%arg0: i32, %arg1: i32) -> (i32, i32) {
    %c1_i32 = arith.constant 1 : i32
    %0 = arith.muli %arg0, %c1_i32 : i32
    %1 = arith.addi %0, %arg1 : i32
    %c0_i32 = arith.constant 0 : i32
    %c0_i32_0 = arith.constant 0 : i32
    return %1, %c0_i32 : i32, i32
  }
  func.func @transform_2(%arg0: i32, %arg1: i32) -> (i32, i32) {
    %c0_i32 = arith.constant 0 : i32
    %c0_i32_0 = arith.constant 0 : i32
    %c0_i32_1 = arith.constant 0 : i32
    return %c0_i32, %c0_i32_0 : i32, i32
  }
  func.func @transform_3(%arg0: i32, %arg1: i32) -> (i32, i32) {
    %c0_i32 = arith.constant 0 : i32
    %c0_i32_0 = arith.constant 0 : i32
    %c0_i32_1 = arith.constant 0 : i32
    return %c0_i32, %c0_i32_0 : i32, i32
  }
  func.func @transform_4(%arg0: i32, %arg1: i32) -> (i32, i32) {
    %c0_i32 = arith.constant 0 : i32
    %c0_i32_0 = arith.constant 0 : i32
    %c0_i32_1 = arith.constant 0 : i32
    return %c0_i32, %c0_i32_0 : i32, i32
  }
  func.func @transform_5(%arg0: i32, %arg1: i32) -> (i32, i32) {
    %c0_i32 = arith.constant 0 : i32
    %c0_i32_0 = arith.constant 0 : i32
    %c0_i32_1 = arith.constant 0 : i32
    return %c0_i32, %c0_i32_0 : i32, i32
  }
  func.func @transform_6(%arg0: i32, %arg1: i32) -> (i32, i32) {
    %c0_i32 = arith.constant 0 : i32
    %c0_i32_0 = arith.constant 0 : i32
    %c0_i32_1 = arith.constant 0 : i32
    return %c0_i32, %c0_i32_0 : i32, i32
  }
  func.func @transform_7(%arg0: i32, %arg1: i32) -> (i32, i32) {
    %c0_i32 = arith.constant 0 : i32
    %c0_i32_0 = arith.constant 0 : i32
    %c0_i32_1 = arith.constant 0 : i32
    return %c0_i32, %c0_i32_0 : i32, i32
  }
  func.func @transform_8(%arg0: i32, %arg1: i32) -> (i32, i32) {
    %c0_i32 = arith.constant 0 : i32
    %c0_i32_0 = arith.constant 0 : i32
    %c0_i32_1 = arith.constant 0 : i32
    return %c0_i32, %c0_i32_0 : i32, i32
  }
  func.func @transform_9(%arg0: i32, %arg1: i32) -> i32 {
    %c0_i32 = arith.constant 0 : i32
    %c0_i32_0 = arith.constant 0 : i32
    return %c0_i32 : i32
  }
  func.func @transform_10(%arg0: i32, %arg1: i32) -> (i32, i32) {
    %c0_i32 = arith.constant 0 : i32
    %c0_i32_0 = arith.constant 0 : i32
    return %arg0, %c0_i32 : i32, i32
  }
}

module attributes {stable_mosaic.version = 11 : i64} {
  func.func @mcm_kernel(%arg0: i32, %arg1: i32, %arg2: memref<16x8xf32, #tpu.memory_space<vmem>>, %arg3: memref<16x128xbf16, #tpu.memory_space<vmem>>, %arg4: memref<128x256xbf16, #tpu.memory_space<vmem>>, %arg5: memref<1x256xf32, #tpu.memory_space<vmem>>, %arg6: memref<1x128xf32, #tpu.memory_space<vmem>>, %arg7: memref<1x128xf32, #tpu.memory_space<vmem>>, %arg8: memref<128x128xbf16, #tpu.memory_space<vmem>>, %arg9: memref<1x128xf32, #tpu.memory_space<vmem>>, %arg10: memref<1x128xf32, #tpu.memory_space<vmem>>, %arg11: memref<1xf32, #tpu.memory_space<smem>>, %arg12: memref<8x128xf32, #tpu.memory_space<vmem>>, %arg13: memref<16x4xf32, #tpu.memory_space<vmem>>) attributes {dimension_semantics = [#tpu.dimension_semantics<parallel>, #tpu.dimension_semantics<arbitrary>], iteration_bounds = array<i64: 1, 1>, scalar_prefetch = 0 : i64, scratch_operands = 1 : i64, tpu.core_type = #tpu.core_type<tc>, window_params = [{transform_indices = @transform_0, window_bounds = array<i64: 16, 8>}, {transform_indices = @transform_1, window_bounds = array<i64: 16, 128>}, {pipeline_mode = #tpu.pipeline_mode<synchronous>, transform_indices = @transform_2, window_bounds = array<i64: 128, 256>}, {pipeline_mode = #tpu.pipeline_mode<synchronous>, transform_indices = @transform_3, window_bounds = array<i64: 1, 256>}, {pipeline_mode = #tpu.pipeline_mode<synchronous>, transform_indices = @transform_4, window_bounds = array<i64: 1, 128>}, {pipeline_mode = #tpu.pipeline_mode<synchronous>, transform_indices = @transform_5, window_bounds = array<i64: 1, 128>}, {pipeline_mode = #tpu.pipeline_mode<synchronous>, transform_indices = @transform_6, window_bounds = array<i64: 128, 128>}, {pipeline_mode = #tpu.pipeline_mode<synchronous>, transform_indices = @transform_7, window_bounds = array<i64: 1, 128>}, {pipeline_mode = #tpu.pipeline_mode<synchronous>, transform_indices = @transform_8, window_bounds = array<i64: 1, 128>}, {transform_indices = @transform_9, window_bounds = array<i64: 1>}, {transform_indices = @transform_10, window_bounds = array<i64: 8, 128>}]} {
    %c0_i32 = arith.constant 0 : i32
    %0 = arith.cmpi eq, %arg1, %c0_i32 : i32
    %1 = arith.extui %0 : i1 to i32
    %c0_i32_0 = arith.constant 0 : i32
    %2 = arith.cmpi ne, %1, %c0_i32_0 : i32
    scf.if %2 {
      %cst_50 = arith.constant 0.000000e+00 : f32
      %107 = vector.broadcast %cst_50 : f32 to vector<16x4xf32>
      %c0_51 = arith.constant 0 : index
      %c0_52 = arith.constant 0 : index
      %108 = vector.load %arg13[%c0_51, %c0_52] : memref<16x4xf32, #tpu.memory_space<vmem>>, vector<16x4xf32>
      tpu.vector_store %arg13[%c0_51, %c0_52], %107 {strides = array<i32>} : memref<16x4xf32, #tpu.memory_space<vmem>>, vector<16x4xf32>,
    } else {
    }
    %c0 = arith.constant 0 : index
    %c0_1 = arith.constant 0 : index
    %3 = vector.load %arg2[%c0, %c0_1] : memref<16x8xf32, #tpu.memory_space<vmem>>, vector<16x8xf32>
    %4 = vector.extract_strided_slice %3 {offsets = [0, 0], sizes = [16, 1], strides = [1, 1]} : vector<16x8xf32> to vector<16x1xf32>
    %5 = arith.fptosi %4 : vector<16x1xf32> to vector<16x1xi32>
    %6 = vector.extract_strided_slice %3 {offsets = [0, 1], sizes = [16, 1], strides = [1, 1]} : vector<16x8xf32> to vector<16x1xf32>
    %7 = vector.extract_strided_slice %3 {offsets = [0, 2], sizes = [16, 1], strides = [1, 1]} : vector<16x8xf32> to vector<16x1xf32>
    %c0_2 = arith.constant 0 : index
    %c0_3 = arith.constant 0 : index
    %8 = vector.load %arg3[%c0_2, %c0_3] : memref<16x128xbf16, #tpu.memory_space<vmem>>, vector<16x128xbf16>
    %c0_4 = arith.constant 0 : index
    %c0_5 = arith.constant 0 : index
    %9 = vector.load %arg4[%c0_4, %c0_5] : memref<128x256xbf16, #tpu.memory_space<vmem>>, vector<128x256xbf16>
    %cst = arith.constant dense<0.000000e+00> : vector<16x256xf32>
    %10 = tpu.matmul %8, %9, %cst {dimension_numbers = #tpu.dot_dimension_numbers<[1], [0], [0], [1], [0, 0, 1, 1], [], []>} : vector<16x128xbf16>, vector<128x256xbf16>, vector<16x256xf32> -> vector<16x256xf32>
    %c0_6 = arith.constant 0 : index
    %c0_7 = arith.constant 0 : index
    %11 = vector.load %arg5[%c0_6, %c0_7] : memref<1x256xf32, #tpu.memory_space<vmem>>, vector<1x256xf32>
    %12 = vector.broadcast %11 : vector<1x256xf32> to vector<16x256xf32>
    %13 = arith.addf %10, %12 : vector<16x256xf32>
    %cst_8 = arith.constant 5.000000e-01 : f32
    %14 = vector.broadcast %cst_8 : f32 to vector<16x256xf32>
    %15 = arith.mulf %14, %13 : vector<16x256xf32>
    %cst_9 = arith.constant 0.707106769 : f32
    %16 = vector.broadcast %cst_9 : f32 to vector<16x256xf32>
    %17 = arith.mulf %13, %16 : vector<16x256xf32>
    %18 = math.erf %17 : vector<16x256xf32>
    %cst_10 = arith.constant 1.000000e+00 : f32
    %19 = vector.broadcast %cst_10 : f32 to vector<16x256xf32>
    %20 = arith.addf %19, %18 : vector<16x256xf32>
    %21 = arith.mulf %15, %20 : vector<16x256xf32>
    %22 = vector.extract_strided_slice %21 {offsets = [0, 0], sizes = [16, 128], strides = [1, 1]} : vector<16x256xf32> to vector<16x128xf32>
    %23 = vector.extract_strided_slice %21 {offsets = [0, 128], sizes = [16, 128], strides = [1, 1]} : vector<16x256xf32> to vector<16x128xf32>
    %cst_11 = arith.constant dense<0.000000e+00> : vector<16xf32>
    %24 = vector.multi_reduction <add>, %22, %cst_11 [1] : vector<16x128xf32> to vector<16xf32>
    %25 = vector.shape_cast %24 : vector<16xf32> to vector<16x1xf32>
    %cst_12 = arith.constant 3.125000e-02 : f32
    %26 = vector.broadcast %cst_12 : f32 to vector<16x1xf32>
    %27 = arith.mulf %25, %26 : vector<16x1xf32>
    %28 = vector.broadcast %27 : vector<16x1xf32> to vector<16x128xf32>
    %29 = arith.subf %22, %28 : vector<16x128xf32>
    %30 = arith.mulf %29, %29 : vector<16x128xf32>
    %cst_13 = arith.constant dense<0.000000e+00> : vector<16xf32>
    %31 = vector.multi_reduction <add>, %30, %cst_13 [1] : vector<16x128xf32> to vector<16xf32>
    %32 = vector.shape_cast %31 : vector<16xf32> to vector<16x1xf32>
    %33 = arith.mulf %27, %27 : vector<16x1xf32>
    %cst_14 = arith.constant 9.600000e+01 : f32
    %34 = vector.broadcast %cst_14 : f32 to vector<16x1xf32>
    %35 = arith.mulf %34, %33 : vector<16x1xf32>
    %36 = arith.subf %32, %35 : vector<16x1xf32>
    %cst_15 = arith.constant 3.125000e-02 : f32
    %37 = vector.broadcast %cst_15 : f32 to vector<16x1xf32>
    %38 = arith.mulf %36, %37 : vector<16x1xf32>
    %39 = vector.broadcast %27 : vector<16x1xf32> to vector<16x128xf32>
    %40 = arith.subf %22, %39 : vector<16x128xf32>
    %cst_16 = arith.constant 9.99999974E-6 : f32
    %41 = vector.broadcast %cst_16 : f32 to vector<16x1xf32>
    %42 = arith.addf %38, %41 : vector<16x1xf32>
    %43 = math.rsqrt %42 : vector<16x1xf32>
    %44 = vector.broadcast %43 : vector<16x1xf32> to vector<16x128xf32>
    %45 = arith.mulf %40, %44 : vector<16x128xf32>
    %c0_17 = arith.constant 0 : index
    %c0_18 = arith.constant 0 : index
    %46 = vector.load %arg6[%c0_17, %c0_18] : memref<1x128xf32, #tpu.memory_space<vmem>>, vector<1x128xf32>
    %47 = vector.broadcast %46 : vector<1x128xf32> to vector<16x128xf32>
    %48 = arith.mulf %45, %47 : vector<16x128xf32>
    %c0_19 = arith.constant 0 : index
    %c0_20 = arith.constant 0 : index
    %49 = vector.load %arg7[%c0_19, %c0_20] : memref<1x128xf32, #tpu.memory_space<vmem>>, vector<1x128xf32>
    %50 = vector.broadcast %49 : vector<1x128xf32> to vector<16x128xf32>
    %51 = arith.addf %48, %50 : vector<16x128xf32>
    %52 = arith.truncf %51 : vector<16x128xf32> to vector<16x128xbf16>
    %c0_21 = arith.constant 0 : index
    %c0_22 = arith.constant 0 : index
    %53 = vector.load %arg8[%c0_21, %c0_22] : memref<128x128xbf16, #tpu.memory_space<vmem>>, vector<128x128xbf16>
    %cst_23 = arith.constant dense<0.000000e+00> : vector<16x128xf32>
    %54 = tpu.matmul %52, %53, %cst_23 {dimension_numbers = #tpu.dot_dimension_numbers<[1], [0], [0], [1], [0, 0, 1, 1], [], []>} : vector<16x128xbf16>, vector<128x128xbf16>, vector<16x128xf32> -> vector<16x128xf32>
    %c0_24 = arith.constant 0 : index
    %c0_25 = arith.constant 0 : index
    %55 = vector.load %arg9[%c0_24, %c0_25] : memref<1x128xf32, #tpu.memory_space<vmem>>, vector<1x128xf32>
    %56 = vector.broadcast %55 : vector<1x128xf32> to vector<16x128xf32>
    %57 = arith.addf %54, %56 : vector<16x128xf32>
    %cst_26 = arith.constant dense<0xFF800000> : vector<16xf32>
    %58 = vector.multi_reduction <maximumf>, %57, %cst_26 [1] : vector<16x128xf32> to vector<16xf32>
    %59 = vector.shape_cast %58 : vector<16xf32> to vector<16x1xf32>
    %60 = vector.broadcast %59 : vector<16x1xf32> to vector<16x128xf32>
    %61 = arith.subf %57, %60 : vector<16x128xf32>
    %62 = math.exp %61 : vector<16x128xf32>
    %cst_27 = arith.constant dense<0.000000e+00> : vector<16xf32>
    %63 = vector.multi_reduction <add>, %62, %cst_27 [1] : vector<16x128xf32> to vector<16xf32>
    %64 = vector.shape_cast %63 : vector<16xf32> to vector<16x1xf32>
    %65 = math.log %64 : vector<16x1xf32>
    %66 = arith.addf %59, %65 : vector<16x1xf32>
    %67 = tpu.iota {dimensions = array<i32: 1>} : vector<16x128xi32>
    %68 = vector.broadcast %5 : vector<16x1xi32> to vector<16x128xi32>
    %69 = arith.cmpi eq, %67, %68 : vector<16x128xi32>
    %cst_28 = arith.constant 0.000000e+00 : f32
    %70 = vector.broadcast %cst_28 : f32 to vector<16x128xf32>
    %71 = arith.select %69, %57, %70 : vector<16x128xi1>, vector<16x128xf32>
    %cst_29 = arith.constant dense<0.000000e+00> : vector<16xf32>
    %72 = vector.multi_reduction <add>, %71, %cst_29 [1] : vector<16x128xf32> to vector<16xf32>
    %73 = vector.shape_cast %72 : vector<16xf32> to vector<16x1xf32>
    %74 = arith.subf %66, %73 : vector<16x1xf32>
    %c0_i32_30 = arith.constant 0 : i32
    %75 = vector.broadcast %c0_i32_30 : i32 to vector<16x1xi32>
    %76 = arith.cmpi ne, %5, %75 : vector<16x1xi32>
    %77 = arith.extui %76 : vector<16x1xi1> to vector<16x1xi32>
    %78 = arith.sitofp %77 : vector<16x1xi32> to vector<16x1xf32>
    %79 = arith.mulf %7, %78 : vector<16x1xf32>
    %c0_31 = arith.constant 0 : index
    %c0_32 = arith.constant 0 : index
    %80 = vector.load %arg10[%c0_31, %c0_32] : memref<1x128xf32, #tpu.memory_space<vmem>>, vector<1x128xf32>
    %81 = vector.broadcast %80 : vector<1x128xf32> to vector<16x128xf32>
    %82 = arith.mulf %23, %81 : vector<16x128xf32>
    %cst_33 = arith.constant dense<0.000000e+00> : vector<16xf32>
    %83 = vector.multi_reduction <add>, %82, %cst_33 [1] : vector<16x128xf32> to vector<16xf32>
    %84 = vector.shape_cast %83 : vector<16xf32> to vector<16x1xf32>
    %c0_34 = arith.constant 0 : index
    %85 = memref.load %arg11[%c0_34] : memref<1xf32, #tpu.memory_space<smem>>
    %86 = vector.broadcast %85 : f32 to vector<16x1xf32>
    %87 = arith.addf %84, %86 : vector<16x1xf32>
    %88 = arith.subf %87, %6 : vector<16x1xf32>
    %89 = arith.mulf %88, %88 : vector<16x1xf32>
    %c0_35 = arith.constant 0 : index
    %c0_36 = arith.constant 0 : index
    %90 = vector.load %arg13[%c0_35, %c0_36] : memref<16x4xf32, #tpu.memory_space<vmem>>, vector<16x1xf32>
    %91 = arith.mulf %74, %79 : vector<16x1xf32>
    %92 = arith.addf %90, %91 : vector<16x1xf32>
    %c0_37 = arith.constant 0 : index
    %c0_38 = arith.constant 0 : index
    %93 = vector.load %arg13[%c0_37, %c0_38] : memref<16x4xf32, #tpu.memory_space<vmem>>, vector<16x1xf32>
    tpu.vector_store %arg13[%c0_37, %c0_38], %92 {strides = array<i32>} : memref<16x4xf32, #tpu.memory_space<vmem>>, vector<16x1xf32>,
    %c0_39 = arith.constant 0 : index
    %c1 = arith.constant 1 : index
    %94 = vector.load %arg13[%c0_39, %c1] : memref<16x4xf32, #tpu.memory_space<vmem>>, vector<16x1xf32>
    %95 = arith.addf %94, %79 : vector<16x1xf32>
    %c0_40 = arith.constant 0 : index
    %c1_41 = arith.constant 1 : index
    %96 = vector.load %arg13[%c0_40, %c1_41] : memref<16x4xf32, #tpu.memory_space<vmem>>, vector<16x1xf32>
    tpu.vector_store %arg13[%c0_40, %c1_41], %95 {strides = array<i32>} : memref<16x4xf32, #tpu.memory_space<vmem>>, vector<16x1xf32>,
    %c0_42 = arith.constant 0 : index
    %c2 = arith.constant 2 : index
    %97 = vector.load %arg13[%c0_42, %c2] : memref<16x4xf32, #tpu.memory_space<vmem>>, vector<16x1xf32>
    %98 = arith.mulf %89, %7 : vector<16x1xf32>
    %99 = arith.addf %97, %98 : vector<16x1xf32>
    %c0_43 = arith.constant 0 : index
    %c2_44 = arith.constant 2 : index
    %100 = vector.load %arg13[%c0_43, %c2_44] : memref<16x4xf32, #tpu.memory_space<vmem>>, vector<16x1xf32>
    tpu.vector_store %arg13[%c0_43, %c2_44], %99 {strides = array<i32>} : memref<16x4xf32, #tpu.memory_space<vmem>>, vector<16x1xf32>,
    %c0_45 = arith.constant 0 : index
    %c3 = arith.constant 3 : index
    %101 = vector.load %arg13[%c0_45, %c3] : memref<16x4xf32, #tpu.memory_space<vmem>>, vector<16x1xf32>
    %102 = arith.addf %101, %7 : vector<16x1xf32>
    %c0_46 = arith.constant 0 : index
    %c3_47 = arith.constant 3 : index
    %103 = vector.load %arg13[%c0_46, %c3_47] : memref<16x4xf32, #tpu.memory_space<vmem>>, vector<16x1xf32>
    tpu.vector_store %arg13[%c0_46, %c3_47], %102 {strides = array<i32>} : memref<16x4xf32, #tpu.memory_space<vmem>>, vector<16x1xf32>,
    %c0_i32_48 = arith.constant 0 : i32
    %104 = arith.cmpi eq, %arg1, %c0_i32_48 : i32
    %105 = arith.extui %104 : i1 to i32
    %c0_i32_49 = arith.constant 0 : i32
    %106 = arith.cmpi ne, %105, %c0_i32_49 : i32
    scf.if %106 {
      %c0_50 = arith.constant 0 : index
      %c0_51 = arith.constant 0 : index
      %107 = vector.load %arg13[%c0_50, %c0_51] : memref<16x4xf32, #tpu.memory_space<vmem>>, vector<16x4xf32>
      %cst_52 = arith.constant dense<0.000000e+00> : vector<4xf32>
      %108 = vector.multi_reduction <add>, %107, %cst_52 [0] : vector<16x4xf32> to vector<4xf32>
      %109 = vector.shape_cast %108 : vector<4xf32> to vector<1x4xf32>
      %110 = tpu.iota {dimensions = array<i32: 1>} : vector<8x128xi32>
      %111 = tpu.iota {dimensions = array<i32: 0>} : vector<8x128xi32>
      %c0_i32_53 = arith.constant 0 : i32
      %112 = vector.broadcast %c0_i32_53 : i32 to vector<8x128xi32>
      %113 = arith.cmpi eq, %110, %112 : vector<8x128xi32>
      %114 = vector.extract_strided_slice %109 {offsets = [0, 0], sizes = [1, 1], strides = [1, 1]} : vector<1x4xf32> to vector<1x1xf32>
      %c1_i32 = arith.constant 1 : i32
      %115 = vector.broadcast %c1_i32 : i32 to vector<8x128xi32>
      %116 = arith.cmpi eq, %110, %115 : vector<8x128xi32>
      %117 = vector.extract_strided_slice %109 {offsets = [0, 1], sizes = [1, 1], strides = [1, 1]} : vector<1x4xf32> to vector<1x1xf32>
      %c2_i32 = arith.constant 2 : i32
      %118 = vector.broadcast %c2_i32 : i32 to vector<8x128xi32>
      %119 = arith.cmpi eq, %110, %118 : vector<8x128xi32>
      %120 = vector.extract_strided_slice %109 {offsets = [0, 2], sizes = [1, 1], strides = [1, 1]} : vector<1x4xf32> to vector<1x1xf32>
      %c3_i32 = arith.constant 3 : i32
      %121 = vector.broadcast %c3_i32 : i32 to vector<8x128xi32>
      %122 = arith.cmpi eq, %110, %121 : vector<8x128xi32>
      %123 = vector.extract_strided_slice %109 {offsets = [0, 3], sizes = [1, 1], strides = [1, 1]} : vector<1x4xf32> to vector<1x1xf32>
      %cst_54 = arith.constant 0.000000e+00 : f32
      %124 = vector.shape_cast %123 : vector<1x1xf32> to vector<1x1xf32>
      %125 = vector.broadcast %124 : vector<1x1xf32> to vector<8x128xf32>
      %126 = vector.broadcast %cst_54 : f32 to vector<8x128xf32>
      %127 = arith.select %122, %125, %126 : vector<8x128xi1>, vector<8x128xf32>
      %128 = vector.shape_cast %120 : vector<1x1xf32> to vector<1x1xf32>
      %129 = vector.broadcast %128 : vector<1x1xf32> to vector<8x128xf32>
      %130 = arith.select %119, %129, %127 : vector<8x128xi1>, vector<8x128xf32>
      %131 = vector.shape_cast %117 : vector<1x1xf32> to vector<1x1xf32>
      %132 = vector.broadcast %131 : vector<1x1xf32> to vector<8x128xf32>
      %133 = arith.select %116, %132, %130 : vector<8x128xi1>, vector<8x128xf32>
      %134 = vector.shape_cast %114 : vector<1x1xf32> to vector<1x1xf32>
      %135 = vector.broadcast %134 : vector<1x1xf32> to vector<8x128xf32>
      %136 = arith.select %113, %135, %133 : vector<8x128xi1>, vector<8x128xf32>
      %c0_i32_55 = arith.constant 0 : i32
      %137 = vector.broadcast %c0_i32_55 : i32 to vector<8x128xi32>
      %138 = arith.cmpi eq, %111, %137 : vector<8x128xi32>
      %cst_56 = arith.constant 0.000000e+00 : f32
      %139 = vector.broadcast %cst_56 : f32 to vector<8x128xf32>
      %140 = arith.select %138, %136, %139 : vector<8x128xi1>, vector<8x128xf32>
      %c0_57 = arith.constant 0 : index
      %c0_58 = arith.constant 0 : index
      %141 = vector.load %arg12[%c0_57, %c0_58] : memref<8x128xf32, #tpu.memory_space<vmem>>, vector<8x128xf32>
      tpu.vector_store %arg12[%c0_57, %c0_58], %140 {strides = array<i32>} : memref<8x128xf32, #tpu.memory_space<vmem>>, vector<8x128xf32>,
    } else {
    }
    return
  }
  func.func @transform_0(%arg0: i32, %arg1: i32) -> (i32, i32) {
    %c1_i32 = arith.constant 1 : i32
    %0 = arith.muli %arg0, %c1_i32 : i32
    %1 = arith.addi %0, %arg1 : i32
    %c0_i32 = arith.constant 0 : i32
    %c0_i32_0 = arith.constant 0 : i32
    return %1, %c0_i32 : i32, i32
  }
  func.func @transform_1(%arg0: i32, %arg1: i32) -> (i32, i32) {
    %c1_i32 = arith.constant 1 : i32
    %0 = arith.muli %arg0, %c1_i32 : i32
    %1 = arith.addi %0, %arg1 : i32
    %c0_i32 = arith.constant 0 : i32
    %c0_i32_0 = arith.constant 0 : i32
    return %1, %c0_i32 : i32, i32
  }
  func.func @transform_2(%arg0: i32, %arg1: i32) -> (i32, i32) {
    %c0_i32 = arith.constant 0 : i32
    %c0_i32_0 = arith.constant 0 : i32
    %c0_i32_1 = arith.constant 0 : i32
    return %c0_i32, %c0_i32_0 : i32, i32
  }
  func.func @transform_3(%arg0: i32, %arg1: i32) -> (i32, i32) {
    %c0_i32 = arith.constant 0 : i32
    %c0_i32_0 = arith.constant 0 : i32
    %c0_i32_1 = arith.constant 0 : i32
    return %c0_i32, %c0_i32_0 : i32, i32
  }
  func.func @transform_4(%arg0: i32, %arg1: i32) -> (i32, i32) {
    %c0_i32 = arith.constant 0 : i32
    %c0_i32_0 = arith.constant 0 : i32
    %c0_i32_1 = arith.constant 0 : i32
    return %c0_i32, %c0_i32_0 : i32, i32
  }
  func.func @transform_5(%arg0: i32, %arg1: i32) -> (i32, i32) {
    %c0_i32 = arith.constant 0 : i32
    %c0_i32_0 = arith.constant 0 : i32
    %c0_i32_1 = arith.constant 0 : i32
    return %c0_i32, %c0_i32_0 : i32, i32
  }
  func.func @transform_6(%arg0: i32, %arg1: i32) -> (i32, i32) {
    %c0_i32 = arith.constant 0 : i32
    %c0_i32_0 = arith.constant 0 : i32
    %c0_i32_1 = arith.constant 0 : i32
    return %c0_i32, %c0_i32_0 : i32, i32
  }
  func.func @transform_7(%arg0: i32, %arg1: i32) -> (i32, i32) {
    %c0_i32 = arith.constant 0 : i32
    %c0_i32_0 = arith.constant 0 : i32
    %c0_i32_1 = arith.constant 0 : i32
    return %c0_i32, %c0_i32_0 : i32, i32
  }
  func.func @transform_8(%arg0: i32, %arg1: i32) -> (i32, i32) {
    %c0_i32 = arith.constant 0 : i32
    %c0_i32_0 = arith.constant 0 : i32
    %c0_i32_1 = arith.constant 0 : i32
    return %c0_i32, %c0_i32_0 : i32, i32
  }
  func.func @transform_9(%arg0: i32, %arg1: i32) -> i32 {
    %c0_i32 = arith.constant 0 : i32
    %c0_i32_0 = arith.constant 0 : i32
    return %c0_i32 : i32
  }
  func.func @transform_10(%arg0: i32, %arg1: i32) -> (i32, i32) {
    %c0_i32 = arith.constant 0 : i32
    %c0_i32_0 = arith.constant 0 : i32
    return %arg0, %c0_i32 : i32, i32
  }
}

</mosaic_0001>

<bundles_post_ra>
// kernel: _mcm_loss.1
= control target key start
LH: loop header
LB: loop body
LE: loop exit
PB: predicated region body
PF: predicated region fallthrough
CT: control target
= control target key end

     0   :  { %s936_s16 = smov 127   ;;  %s940_s21 = smov 126   ;;  %s1260_s2 = inlined_call_operand.vmem [shape: bf16[128,256], index: 2, kind: input, shape index: {}]   ;;  %s1261_s1 = inlined_call_operand.vmem [shape: bf16[16,128], index: 1, kind: input, shape index: {}]   ;;  %s1262_s3 = inlined_call_operand.vmem [shape: f32[1,256], index: 3, kind: input, shape index: {}]   ;;  %s1263_s4 = inlined_call_operand.vmem [shape: f32[1,128], index: 4, kind: input, shape index: {}]   ;;  %s1264_s5 = inlined_call_operand.vmem [shape: f32[1,128], index: 5, kind: input, shape index: {}]   ;;  %s1265_s6 = inlined_call_operand.vmem [shape: bf16[128,128], index: 6, kind: input, shape index: {}]   ;;  %s1266_s0 = inlined_call_operand.vmem [shape: f32[16,8], index: 0, kind: input, shape index: {}]   ;;  %s1267_s7 = inlined_call_operand.vmem [shape: f32[1,128], index: 7, kind: input, shape index: {}]   ;;  %s1268_s8 = inlined_call_operand.vmem [shape: f32[1,128], index: 8, kind: input, shape index: {}]   ;;  %s1269_s9 = inlined_call_operand.<no memory space> [shape: f32[1], index: 9, kind: input, shape index: {}]   ;;  %s1270_s10 = inlined_call_operand.vmem [shape: f32[8,128], index: 10, kind: output, shape index: {}]  }
   0x1   :  { %v811_v0 = vld [vmem:[%s1260_s2 + $0x70] sm:$0xf]  ;;  %v871_v1 = vld [vmem:[%s1260_s2 + $0x74] sm:$0xf0]  ;;  %v803_v2 = vld [vmem:[%s1260_s2 + $0x60] sm:$0xf] }
   0x2   :  { %v812_v3 = vor.u32 %v871_v1, %v811_v0  ;;  %v869_v4 = vld [vmem:[%s1260_s2 + $0x64] sm:$0xf0]  ;;  %v795_v6 = vld [vmem:[%s1260_s2 + $0x50] sm:$0xf]  ;;  %v867_v7 = vld [vmem:[%s1260_s2 + $0x54] sm:$0xf0] }
   0x3   :  { %v804_v5 = vor.u32 %v869_v4, %v803_v2  ;;  %v796_v8 = vor.u32 %v867_v7, %v795_v6  ;;  %v787_v9 = vld [vmem:[%s1260_s2 + $0x40] sm:$0xf]  ;;  %v865_v10 = vld [vmem:[%s1260_s2 + $0x44] sm:$0xf0]  ;;  %v779_v12 = vld [vmem:[%s1260_s2 + $0x30] sm:$0xf] }
   0x4   :  { %201 = vmatpush.bf16.msra.mxu0 %v812_v3  ;;  %v788_v11 = vor.u32 %v865_v10, %v787_v9  ;;  %v863_v13 = vld [vmem:[%s1260_s2 + $0x34] sm:$0xf0]  ;;  %v771_v15 = vld [vmem:[%s1260_s2 + $0x20] sm:$0xf]  ;;  %v861_v16 = vld [vmem:[%s1260_s2 + $0x24] sm:$0xf0] }
   0x5   :  { %v780_v14 = vor.u32 %v863_v13, %v779_v12  ;;  %v772_v17 = vor.u32 %v861_v16, %v771_v15  ;;  %v763_v18 = vld [vmem:[%s1260_s2 + $0x10] sm:$0xf]  ;;  %v859_v19 = vld [vmem:[%s1260_s2 + $0x14] sm:$0xf0]  ;;  %v755_v21 = vld [vmem:[%s1260_s2] sm:$0xf] }
   0x6   :  { %v764_v20 = vor.u32 %v859_v19, %v763_v18  ;;  %v857_v22 = vld [vmem:[%s1260_s2 + $0x4] sm:$0xf0]  ;;  %v1050_v24 = vld [vmem:[%s1261_s1] sm:$0xff] }
   0x7   :  { %v756_v23 = vor.u32 %v857_v22, %v755_v21  ;;  %v1056_v25 = vld [vmem:[%s1262_s3] sm:$0x3] }
   0x8   :  { %202 = vmatpush.bf16.msra.mxu0 %v804_v5  ;;  %v111_v26 = vperm.slane %v1056_v25, 0 }
   0xc   :  { %203 = vmatpush.bf16.msra.mxu0 %v796_v8 }
  0x10   :  { %204 = vmatpush.bf16.msra.mxu0 %v788_v11 }
  0x14   :  { %205 = vmatpush.bf16.msra.mxu0 %v780_v14 }
  0x18   :  { %206 = vmatpush.bf16.msra.mxu0 %v772_v17 }
  0x1c   :  { %207 = vmatpush.bf16.msra.mxu0 %v764_v20 }
  0x20   :  { %208 = vmatpush.bf16.msra.mxu0 %v756_v23 }
  0x23   :  { %209 = vmatmul.bf16.vlgmr.msra.gmra.mxu0 %v1050_v24 }
  0xa0   :  { %v210_v27 = vpop.f32.mrf.mxu0 }
  0xa1   :  { %v1059_v28 = vadd.f32 %v210_v27, %v111_v26 }
  0xa3   :  { %v233_v29 = vmul.f32 0.70710677, %v1059_v28 }
  0xa5   :  { %v237_v30 = vmul.f32 %v233_v29, %v233_v29 }
  0xa7   :  { %v238_v31 = vmin.f32 %v237_v30, 16.0 }
  0xa8   :  { %v212_v32 = vpop.f32.mrf.mxu0 }
  0xa9   :  { %v239_v33 = vmul.f32 2.1237322e-06, %v238_v31  ;;  %v1062_v34 = vadd.f32 %v212_v32, %v111_v26  ;;  %v250_v35 = vmul.f32 3.8918573e-05, %v238_v31 }
  0xab   :  { %v240_v36 = vadd.f32 0.00028619796, %v239_v33  ;;  %v1065_v37 = vmul.f32 0.70710677, %v1062_v34  ;;  %v251_v38 = vadd.f32 0.001143296, %v250_v35 }
  0xad   :  { %v241_v39 = vmul.f32 %v240_v36, %v238_v31  ;;  %v317_v40 = vmul.f32 %v1065_v37, %v1065_v37  ;;  %v252_v41 = vmul.f32 %v251_v38, %v238_v31 }
  0xaf   :  { %v318_v42 = vmin.f32 %v317_v40, 16.0  ;;  %v253_v43 = vadd.f32 0.014752088, %v252_v41  ;;  %v242_v44 = vadd.f32 0.0036580483, %v241_v39  ;;  %v229_v39 = vmul.f32 0.5, %v1059_v28 }
  0xb0   :  { %v870_v28 = vld [vmem:[%s1260_s2 + $0x74] sm:$0xf] }
  0xb1   :  { %v319_v45 = vmul.f32 2.1237322e-06, %v318_v42  ;;  %v330_v46 = vmul.f32 3.8918573e-05, %v318_v42  ;;  %v254_v47 = vmul.f32 %v253_v43, %v238_v31  ;;  %v243_v51 = vmul.f32 %v242_v44, %v238_v31 }
  0xb3   :  { %v320_v48 = vadd.f32 0.00028619796, %v319_v45  ;;  %v331_v49 = vadd.f32 0.001143296, %v330_v46  ;;  %v255_v50 = vadd.f32 0.112945676, %v254_v47 }
  0xb4   :  { %v244_v58 = vadd.f32 0.05243302, %v243_v51  ;;  %v231_v47 = vmul.f32 0.5, %v1062_v34  ;;  %v805_v34 = vld [vmem:[%s1260_s2 + $0x68] sm:$0xf0] }
  0xb5   :  { %v321_v52 = vmul.f32 %v320_v48, %v318_v42  ;;  %v332_v53 = vmul.f32 %v331_v49, %v318_v42  ;;  %v256_v54 = vmul.f32 %v255_v50, %v238_v31  ;;  %v868_v50 = vld [vmem:[%s1260_s2 + $0x64] sm:$0xf] }
  0xb6   :  { %v245_v0 = vmul.f32 %v244_v58, %v238_v31 }
  0xb7   :  { %v333_v55 = vadd.f32 0.014752088, %v332_v53  ;;  %v322_v56 = vadd.f32 0.0036580483, %v321_v52  ;;  %v257_v57 = vadd.f32 0.4994258, %v256_v54  ;;  %v808_v52 = vor.u32 %v868_v50, %v805_v34 }
  0xb8   :  { %v246_v4 = vadd.f32 0.18741608, %v245_v0  ;;  %v866_v53 = vld [vmem:[%s1260_s2 + $0x54] sm:$0xf]  ;;  %v797_v54 = vld [vmem:[%s1260_s2 + $0x58] sm:$0xf0] }
  0xb9   :  { %v334_v59 = vmul.f32 %v333_v55, %v318_v42  ;;  %v258_v60 = vmul.f32 %v257_v57, %v238_v31  ;;  %v323_v62 = vmul.f32 %v322_v56, %v318_v42  ;;  %v800_v55 = vor.u32 %v866_v53, %v797_v54  ;;  %v864_v56 = vld [vmem:[%s1260_s2 + $0x44] sm:$0xf]  ;;  %v789_v57 = vld [vmem:[%s1260_s2 + $0x48] sm:$0xf0] }
  0xba   :  { %v247_v9 = vmul.f32 %v246_v4, %v238_v31  ;;  %v792_v58 = vor.u32 %v864_v56, %v789_v57  ;;  %v781_v4 = vld [vmem:[%s1260_s2 + $0x38] sm:$0xf0] }
  0xbb   :  { %v335_v61 = vadd.f32 0.112945676, %v334_v59  ;;  %v259_v63 = vadd.f32 1.0, %v258_v60  ;;  %v324_v3 = vadd.f32 0.05243302, %v323_v62 }
  0xbc   :  { %v248_v14 = vadd.f32 1.1283791, %v247_v9  ;;  %v879_v9 = vld [vmem:[%s1265_s6 + $0x38] sm:$0xff] }
  0xbd   :  { %v336_v1 = vmul.f32 %v335_v61, %v318_v42  ;;  %915 = vrcp.f32 %v259_v63  ;;  %v325_v8 = vmul.f32 %v324_v3, %v318_v42  ;;  %v271_v13 = vand.u32 2147483648, %v259_v63  ;;  %v862_v3 = vld [vmem:[%s1260_s2 + $0x34] sm:$0xf]  ;;  %532 = vmatpush.bf16.msra.mxu2 %v879_v9 }
  0xbe   :  { %v269_v16 = vand.u32 2147483647, %v259_v63  ;;  %vm265_vm1 = vweird.f32 %v259_v63  ;;  %v249_v22 = vmul.f32 %v248_v14, %v233_v29  ;;  %v856_v14 = vld [vmem:[%s1260_s2 + $0x4] sm:$0xf] }
  0xbf   :  { %v337_v2 = vadd.f32 0.4994258, %v336_v1  ;;  %v326_v12 = vadd.f32 0.18741608, %v325_v8  ;;  %v272_v20 = vor.u32 1.1754944e-38, %v271_v13  ;;  %v878_v13 = vld [vmem:[%s1265_s6 + $0x30] sm:$0xff] }
  0xc0   :  { %vm270_vm3 = vcmp.eq.f32.partialorder %v269_v16, 8.507059e+37 }
  0xc1   :  { %v338_v5 = vmul.f32 %v337_v2, %v318_v42  ;;  %v327_v19 = vmul.f32 %v326_v12, %v318_v42  ;;  %533 = vmatpush.bf16.msra.mxu2 %v878_v13 }
  0xc3   :  { %v339_v6 = vadd.f32 1.0, %v338_v5  ;;  %v916_v7 = vpop.eup %915  ;;  %v328_v32 = vadd.f32 1.1283791, %v327_v19  ;;  %v784_v5 = vor.u32 %v862_v3, %v781_v4  ;;  %v875_v19 = vld [vmem:[%s1265_s6 + $0x18] sm:$0xff]  ;;  %v912_v3 = vld [vmem:[%s1264_s5] ss:$0 sm:$0xff] }
  0xc4   :  { %v261_v10 = vmul.f32 %v916_v7, %v259_v63  ;;  %vm266_vm0 = vweird.f32 %v916_v7 }
  0xc5   :  { %917 = vrcp.f32 %v339_v6  ;;  %vm267_vm2 = vmor %vm265_vm1, %vm266_vm0  ;;  %v351_v31 = vand.u32 2147483648, %v339_v6  ;;  %v349_v35 = vand.u32 2147483647, %v339_v6  ;;  %vm345_vm5 = vweird.f32 %v339_v6 }
  0xc6   :  { %v262_v11 = vsub.f32 1.0, %v261_v10  ;;  %v329_v29 = vmul.f32 %v328_v32, %v1065_v37  ;;  %v813_v37 = vld [vmem:[%s1260_s2 + $0x78] sm:$0xf0]  ;;  %v858_v10 = vld [vmem:[%s1260_s2 + $0x14] sm:$0xf] }
  0xc7   :  { %v352_v41 = vor.u32 1.1754944e-38, %v351_v31  ;;  %vm350_vm7 = vcmp.eq.f32.partialorder %v349_v35, 8.507059e+37  ;;  %v816_v51 = vor.u32 %v870_v28, %v813_v37 }
  0xc8   :  { %v263_v15 = vmul.f32 %v916_v7, %v262_v11  ;;  %v765_v11 = vld [vmem:[%s1260_s2 + $0x18] sm:$0xf0] }
  0xc9   :  { %215 = vmatpush.bf16.msra.mxu1 %v816_v51  ;;  %v768_v12 = vor.u32 %v858_v10, %v765_v11 }
  0xca   :  { %v264_v18 = vadd.f32 %v916_v7, %v263_v15  ;;  %v757_v15 = vld [vmem:[%s1260_s2 + $0x8] sm:$0xf0] }
  0xcb   :  { %v918_v17 = vpop.eup %917  ;;  %v760_v16 = vor.u32 %v856_v14, %v757_v15 }
  0xcc   :  { %v341_v21 = vmul.f32 %v918_v17, %v339_v6  ;;  %v268_v23 = vsel %vm267_vm2, %v916_v7, %v264_v18  ;;  %vm346_vm4 = vweird.f32 %v918_v17  ;;  %v860_v6 = vld [vmem:[%s1260_s2 + $0x24] sm:$0xf]  ;;  %v773_v7 = vld [vmem:[%s1260_s2 + $0x28] sm:$0xf0] }
  0xcd   :  { %v273_v26 = vsel %vm270_vm3, %v272_v20, %v268_v23  ;;  %vm347_vm6 = vmor %vm345_vm5, %vm346_vm4  ;;  %216 = vmatpush.bf16.msra.mxu1 %v808_v52  ;;  %v776_v8 = vor.u32 %v860_v6, %v773_v7  ;;  %v876_v18 = vld [vmem:[%s1265_s6 + $0x20] sm:$0xff] }
  0xce   :  { %v342_v27 = vsub.f32 1.0, %v341_v21  ;;  %v274_v30 = vmul.f32 %v273_v26, %v249_v22  ;;  %v874_v21 = vld [vmem:[%s1265_s6 + $0x10] sm:$0xff] }
  0xd0   :  { %v343_v33 = vmul.f32 %v918_v17, %v342_v27  ;;  %v817_v36 = vclamps-f32 %v274_v30, 1.0  ;;  %v872_v27 = vld [vmem:[%s1265_s6] sm:$0xff] }
  0xd1   :  { %217 = vmatpush.bf16.msra.mxu1 %v800_v55 }
  0xd2   :  { %v344_v38 = vadd.f32 %v918_v17, %v343_v33  ;;  %v397_v40 = vadd.f32 1.0, %v817_v36 }
  0xd4   :  { %v348_v42 = vsel %vm347_vm6, %v918_v17, %v344_v38  ;;  %v401_v43 = vmul.f32 %v397_v40, %v229_v39  ;;  %v877_v17 = vld [vmem:[%s1265_s6 + $0x28] sm:$0xff]  ;;  %v1156_v38 = vld [vmem:[%s1266_s0] sm:$0xff]  ;;  %v935_v40 = vmov 0  }
  0xd5   :  { %v353_v44 = vsel %vm350_vm7, %v352_v41, %v348_v42  ;;  %218 = vmatpush.bf16.msra.mxu1 %v792_v58  ;;  %534 = vmatpush.bf16.msra.mxu2 %v877_v17  ;;  %v1161_v39 = vld [vmem:[%s1266_s0 + $0x8] sm:$0xff]  ;;  %vm880_vm8 = vcmp.lt.s32.totalorder %v1156_v38, 0  ;;  %v881_v41 = vceil.f32 %v1156_v38 }
  0xd6   :  { %v354_v45 = vmul.f32 %v353_v44, %v329_v29  ;;  %405 = vadd.xlane.f32.xlu0 %v401_v43  ;;  %v882_v29 = vfloor.f32 %v1156_v38  ;;  %900 = vset.pattern.permute.xlu1 %v935_v40  ;;  %vm885_vm9 = vcmp.lt.s32.totalorder %v1161_v39, 0  ;;  %v887_v44 = vfloor.f32 %v1161_v39 }
  0xd7   :  { %899 = vset.pattern.permute.xlu0 %v935_v40 }
  0xd8   :  { %v819_v46 = vclamps-f32 %v354_v45, 1.0  ;;  %v1171_v45 = vsel %vm880_vm8, %v881_v41, %v882_v29 }
  0xd9   :  { %219 = vmatpush.bf16.msra.mxu1 %v784_v5  ;;  %535 = vmatpush.bf16.msra.mxu2 %v876_v18 }
  0xda   :  { %v399_v48 = vadd.f32 1.0, %v819_v46 }
  0xdc   :  { %v403_v49 = vmul.f32 %v399_v48, %v231_v47  ;;  %v884_v48 = vcvt.f32.s32 %v1171_v45 }
  0xdd   :  { %220 = vmatpush.bf16.msra.mxu1 %v776_v8  ;;  %536 = vmatpush.bf16.msra.mxu2 %v875_v19 }
  0xde   :  { %407 = vadd.xlane.f32.xlu0 %v403_v49  ;;  %vm584_vm0 = vcmp.ne.s32.totalorder %v884_v48, 0 }
  0xe1   :  { %221 = vmatpush.bf16.msra.mxu1 %v768_v12  ;;  %537 = vmatpush.bf16.msra.mxu2 %v874_v21 }
  0xe5   :  { %222 = vmatpush.bf16.msra.mxu1 %v760_v16 }
  0xe8   :  { %223 = vmatmul.bf16.vlgmr.msra.gmra.mxu1 %v1050_v24  ;;  %v873_v24 = vld [vmem:[%s1265_s6 + $0x8] sm:$0xff] }
  0xe9   :  { %538 = vmatpush.bf16.msra.mxu2 %v873_v24 }
  0xed   :  { %539 = vmatpush.bf16.msra.mxu2 %v872_v27 }
  0xf2   :  { %569 = vperm.xlu0 %899, %v884_v48  }
  0xfa   :  { %654 = vrot.lane.b32.xlu0 %v1156_v38, %s936_s16 }
 0x149   :  { %v406_v59 = vpop.xlane.xlu0 %405 }
 0x14a   :  { %v409_v60 = vmul.f32 0.03125, %v406_v59 }
 0x14c   :  { %v1096_v61 = vsub.f32 %v401_v43, %v409_v60  ;;  %v419_v20 = vmul.f32 %v409_v60, %v409_v60  ;;  %v886_v43 = vceil.f32 %v1161_v39  ;;  %v911_v60 = vld [vmem:[%s1263_s4] ss:$0 sm:$0xff]  ;;  %s938_s4 = smov 2  }
 0x14e   :  { %v413_v62 = vmul.f32 %v1096_v61, %v1096_v61  ;;  %v421_v22 = vmul.f32 96.0, %v419_v20 }
 0x150   :  { %415 = vadd.xlane.f32.xlu1 %v413_v62 }
 0x151   :  { %v408_v63 = vpop.xlane.xlu0 %407 }
 0x152   :  { %v410_v0 = vmul.f32 0.03125, %v408_v63 }
 0x154   :  { %v1100_v1 = vsub.f32 %v403_v49, %v410_v0  ;;  %v420_v30 = vmul.f32 %v410_v0, %v410_v0  ;;  %v1174_v49 = vsel %vm885_vm9, %v886_v43, %v887_v44  ;;  %v937_v44 = vmov 0.0  }
 0x155   :  { %v889_v37 = vcvt.f32.s32 %v1174_v49 }
 0x156   :  { %v414_v2 = vmul.f32 %v1100_v1, %v1100_v1  ;;  %v422_v33 = vmul.f32 96.0, %v420_v30 }
 0x157   :  { %vm585_vm1 = vcmp.ne.s32.totalorder %v889_v37, 0 }
 0x158   :  { %417 = vadd.xlane.f32.xlu1 %v414_v2 }
 0x165   :  { %v224_v8 = vpop.f32.mrf.mxu1 }
 0x171   :  { %572 = vperm.xlu1 %900, %v889_v37  }
 0x1c3   :  { %v416_v23 = vpop.xlane.xlu1 %415 }
 0x1c4   :  { %v423_v26 = vsub.f32 %v416_v23, %v421_v22 }
 0x1c6   :  { %v425_v31 = vmul.f32 0.03125, %v423_v26  ;;  %v226_v26 = vpop.f32.mrf.mxu1 }
 0x1c8   :  { %v427_v32 = vadd.f32 1e-05, %v425_v31 }
 0x1ca   :  { %919 = vrsqrt.f32 %v427_v32  ;;  %vm435_vm11 = vweird.f32 %v427_v32 }
 0x1cb   :  { %v418_v35 = vpop.xlane.xlu1 %417 }
 0x1cc   :  { %v424_v36 = vsub.f32 %v418_v35, %v422_v33 }
 0x1ce   :  { %v426_v42 = vmul.f32 0.03125, %v424_v36 }
 0x1d0   :  { %v920_v46 = vpop.eup %919  ;;  %v428_v47 = vadd.f32 1e-05, %v426_v42 }
 0x1d1   :  { %v430_v28 = vmul.f32 %v920_v46, %v427_v32  ;;  %vm436_vm10 = vweird.f32 %v920_v46 }
 0x1d2   :  { %921 = vrsqrt.f32 %v428_v47  ;;  %vm437_vm12 = vmor %vm435_vm11, %vm436_vm10  ;;  %vm445_vm14 = vweird.f32 %v428_v47 }
 0x1d3   :  { %v431_v50 = vmul.f32 %v920_v46, %v430_v28 }
 0x1d5   :  { %v432_v51 = vmul.f32 0.5, %v431_v50 }
 0x1d7   :  { %v433_v34 = vsub.f32 1.5, %v432_v51 }
 0x1d8   :  { %v922_v52 = vpop.eup %921 }
 0x1d9   :  { %v434_v53 = vmul.f32 %v920_v46, %v433_v34  ;;  %v440_v54 = vmul.f32 %v922_v52, %v428_v47  ;;  %vm446_vm13 = vweird.f32 %v922_v52  ;;  %v854_v47 = vsel %vm585_vm1, 1.0, %v937_v44 }
 0x1da   :  { %vm447_vm15 = vmor %vm445_vm14, %vm446_vm13  ;;  %vm632_vm13 = vcmask 7168   ;;  %vm647_vm14 = vcmask 15368  }
 0x1db   :  { %v441_v55 = vmul.f32 %v922_v52, %v440_v54  ;;  %v438_v57 = vsel %vm437_vm12, %v920_v46, %v434_v53  ;;  %v853_v46 = vsel %vm584_vm0, 1.0, %v937_v44  ;;  %vm84_vm12 = vcmask 31744  }
 0x1dc   :  { %v449_v59 = vmul.f32 %v438_v57, %v1096_v61  ;;  %v112_v61 = vperm.slane %v1056_v25, 1  ;;  %v901_v50 = vpack.i.bf16 %v854_v47, %v853_v46  ;;  %85 = vst.msk [vmem:[#allocation2] sm:$0xff] %vm84_vm12, %v937_v44  ;;  %vm685_vm0 = vcmask 31768  }
 0x1dd   :  { %v442_v56 = vmul.f32 0.5, %v441_v55  ;;  %86 = vst.msk [vmem:[#allocation2 + $0x8] sm:$0xff] %vm84_vm12, %v937_v44 }
 0x1de   :  { %v455_v2 = vmul.f32 %v911_v60, %v449_v59  ;;  %v1192_v9 = vadd.f32 %v224_v8, %v112_v61  ;;  %v1199_v27 = vadd.f32 %v226_v26, %v112_v61  ;;  %902 = vrot.lane.b32.xlu1 %v901_v50, %s938_s4 }
 0x1df   :  { %v443_v58 = vsub.f32 1.5, %v442_v56 }
 0x1e0   :  { %v461_v5 = vadd.f32 %v912_v3, %v455_v2  ;;  %v1202_v31 = vmul.f32 0.70710677, %v1199_v27  ;;  %v232_v50 = vmul.f32 0.5, %v1199_v27 }
 0x1e1   :  { %v444_v62 = vmul.f32 %v922_v52, %v443_v58  ;;  %v913_v58 = vld [vmem:[%s1267_s7] ss:$0 sm:$0xff] }
 0x1e2   :  { %v357_v33 = vmul.f32 %v1202_v31, %v1202_v31 }
 0x1e3   :  { %v448_v63 = vsel %vm447_vm15, %v922_v52, %v444_v62  ;;  %vm672_vm15 = vcmask 23568  }
 0x1e4   :  { %v450_v0 = vmul.f32 %v448_v63, %v1100_v1  ;;  %v1195_v1 = vmul.f32 0.70710677, %v1192_v9  ;;  %v358_v36 = vmin.f32 %v357_v33, 16.0 }
 0x1e6   :  { %v456_v4 = vmul.f32 %v911_v60, %v450_v0  ;;  %v277_v10 = vmul.f32 %v1195_v1, %v1195_v1  ;;  %v359_v29 = vmul.f32 2.1237322e-06, %v358_v36  ;;  %v370_v28 = vmul.f32 3.8918573e-05, %v358_v36 }
 0x1e8   :  { %v462_v6 = vadd.f32 %v912_v3, %v456_v4  ;;  %v278_v11 = vmin.f32 %v277_v10, 16.0  ;;  %v360_v43 = vadd.f32 0.00028619796, %v359_v29  ;;  %v371_v52 = vadd.f32 0.001143296, %v370_v28 }
 0x1ea   :  { %v463_v7 = vpack.c.bf16 %v462_v6, %v461_v5  ;;  %v290_v12 = vmul.f32 3.8918573e-05, %v278_v11  ;;  %v279_v19 = vmul.f32 2.1237322e-06, %v278_v11  ;;  %v361_v34 = vmul.f32 %v360_v43, %v358_v36 }
 0x1eb   :  { %v372_v45 = vmul.f32 %v371_v52, %v358_v36 }
 0x1ec   :  { %540 = vmatmul.bf16.vlgmr.msra.gmra.mxu2 %v463_v7  ;;  %v291_v13 = vadd.f32 0.001143296, %v290_v12  ;;  %v280_v25 = vadd.f32 0.00028619796, %v279_v19  ;;  %v362_v54 = vadd.f32 0.0036580483, %v361_v34  ;;  %v573_v34 = vpop.permute.xlu1 %572 }
 0x1ed   :  { %v373_v55 = vadd.f32 0.014752088, %v372_v45 }
 0x1ee   :  { %v292_v14 = vmul.f32 %v291_v13, %v278_v11  ;;  %v281_v24 = vmul.f32 %v280_v25, %v278_v11  ;;  %v363_v37 = vmul.f32 %v362_v54, %v358_v36  ;;  %v566_v13 = vlaneseq }
 0x1ef   :  { %v374_v57 = vmul.f32 %v373_v55, %v358_v36 }
 0x1f0   :  { %v293_v15 = vadd.f32 0.014752088, %v292_v14  ;;  %v282_v23 = vadd.f32 0.0036580483, %v281_v24  ;;  %v364_v2 = vadd.f32 0.05243302, %v363_v37 }
 0x1f1   :  { %v375_v62 = vadd.f32 0.112945676, %v374_v57 }
 0x1f2   :  { %v294_v16 = vmul.f32 %v293_v15, %v278_v11  ;;  %v283_v30 = vmul.f32 %v282_v23, %v278_v11  ;;  %v365_v8 = vmul.f32 %v364_v2, %v358_v36 }
 0x1f3   :  { %v376_v4 = vmul.f32 %v375_v62, %v358_v36 }
 0x1f4   :  { %v295_v17 = vadd.f32 0.112945676, %v294_v16  ;;  %v284_v35 = vadd.f32 0.05243302, %v283_v30  ;;  %v366_v16 = vadd.f32 0.18741608, %v365_v8 }
 0x1f5   :  { %v377_v7 = vadd.f32 0.4994258, %v376_v4 }
 0x1f6   :  { %v296_v18 = vmul.f32 %v295_v17, %v278_v11  ;;  %v285_v42 = vmul.f32 %v284_v35, %v278_v11  ;;  %v367_v25 = vmul.f32 %v366_v16, %v358_v36 }
 0x1f8   :  { %v297_v20 = vadd.f32 0.4994258, %v296_v18  ;;  %v286_v53 = vadd.f32 0.18741608, %v285_v42  ;;  %v1217_v18 = vand.u32 127, %v566_v13 }
 0x1f9   :  { %v368_v23 = vadd.f32 1.1283791, %v367_v25 }
 0x1fa   :  { %v298_v21 = vmul.f32 %v297_v20, %v278_v11  ;;  %v287_v49 = vmul.f32 %v286_v53, %v278_v11  ;;  %v378_v11 = vmul.f32 %v377_v7, %v358_v36  ;;  %v570_v20 = vpop.permute.xlu0 %569  ;;  %v914_v36 = vld [vmem:[%s1268_s8] ss:$0 sm:$0xff]  ;;  %vm575_vm11 = vcmp.eq.s32.totalorder %v1217_v18, %v573_v34  ;;  %s939_s8 = smov 1  }
 0x1fb   :  { %vm574_vm6 = vcmp.eq.s32.totalorder %v1217_v18, %v570_v20  ;;  %v369_v29 = vmul.f32 %v368_v23, %v1202_v31  ;;  %vm708_vm1 = vcmp.eq.s32.totalorder %v1217_v18, 3 }
 0x1fc   :  { %v299_v22 = vadd.f32 1.0, %v298_v21  ;;  %v288_v63 = vadd.f32 1.1283791, %v287_v49  ;;  %v379_v12 = vadd.f32 1.0, %v378_v11 }
 0x1fe   :  { %923 = vrcp.f32 %v299_v22  ;;  %vm305_vm2 = vweird.f32 %v299_v22  ;;  %v311_v56 = vand.u32 2147483648, %v299_v22  ;;  %v309_v60 = vand.u32 2147483647, %v299_v22 }
 0x1ff   :  { %v289_v61 = vmul.f32 %v288_v63, %v1195_v1  ;;  %925 = vrcp.f32 %v379_v12  ;;  %v230_v1 = vmul.f32 0.5, %v1192_v9  ;;  %v391_v26 = vand.u32 2147483648, %v379_v12 }
 0x200   :  { %v312_v3 = vor.u32 1.1754944e-38, %v311_v56  ;;  %vm310_vm5 = vcmp.eq.f32.partialorder %v309_v60, 8.507059e+37  ;;  %vm385_vm7 = vweird.f32 %v379_v12 }
 0x201   :  { %v392_v9 = vor.u32 1.1754944e-38, %v391_v26 }
 0x204   :  { %v924_v32 = vpop.eup %923 }
 0x205   :  { %v301_v41 = vmul.f32 %v924_v32, %v299_v22  ;;  %vm306_vm3 = vweird.f32 %v924_v32  ;;  %v926_v21 = vpop.eup %925 }
 0x206   :  { %vm307_vm4 = vmor %vm305_vm2, %vm306_vm3  ;;  %v381_v22 = vmul.f32 %v926_v21, %v379_v12  ;;  %vm386_vm8 = vweird.f32 %v926_v21  ;;  %vm707_vm2 = vcmp.eq.s32.totalorder %v1217_v18, 2  ;;  %vm706_vm3 = vcmp.eq.s32.totalorder %v1217_v18, 1 }
 0x207   :  { %v302_v51 = vsub.f32 1.0, %v301_v41  ;;  %vm387_vm9 = vmor %vm385_vm7, %vm386_vm8 }
 0x208   :  { %v382_v30 = vsub.f32 1.0, %v381_v22 }
 0x209   :  { %v303_v48 = vmul.f32 %v924_v32, %v302_v51 }
 0x20a   :  { %v383_v41 = vmul.f32 %v926_v21, %v382_v30  ;;  %v655_v30 = vpop.permute.xlu0 %654 }
 0x20b   :  { %v304_v59 = vadd.f32 %v924_v32, %v303_v48 }
 0x20c   :  { %v384_v42 = vadd.f32 %v926_v21, %v383_v41 }
 0x20d   :  { %v308_v6 = vsel %vm307_vm4, %v924_v32, %v304_v59  ;;  %v389_v32 = vand.u32 2147483647, %v379_v12  ;;  %vm705_vm4 = vcmp.eq.s32.totalorder %v1217_v18, 0 }
 0x20e   :  { %v313_v10 = vsel %vm310_vm5, %v312_v3, %v308_v6  ;;  %v388_v46 = vsel %vm387_vm9, %v926_v21, %v384_v42  ;;  %v611_v3 = vstv %s1269_s9  ;;  %v942_v42 = vmov 2  }
 0x20f   :  { %v314_v14 = vmul.f32 %v313_v10, %v289_v61  ;;  %vm390_vm10 = vcmp.eq.f32.partialorder %v389_v32, 8.507059e+37  ;;  %907 = vset.pattern.permute.xlu0 %v942_v42 }
 0x210   :  { %v393_v47 = vsel %vm390_vm10, %v392_v9, %v388_v46 }
 0x211   :  { %v818_v19 = vclamps-f32 %v314_v14, 1.0  ;;  %v394_v28 = vmul.f32 %v393_v47, %v369_v29  ;;  %v941_v29 = vmov 3  }
 0x212   :  { %906 = vset.pattern.permute.xlu2 %v941_v29 }
 0x213   :  { %v398_v24 = vadd.f32 1.0, %v818_v19  ;;  %v820_v51 = vclamps-f32 %v394_v28, 1.0 }
 0x215   :  { %v402_v35 = vmul.f32 %v398_v24, %v230_v1  ;;  %v400_v52 = vadd.f32 1.0, %v820_v51 }
 0x217   :  { %v604_v43 = vmul.f32 %v914_v36, %v402_v35  ;;  %v404_v53 = vmul.f32 %v400_v52, %v232_v50 }
 0x219   :  { %v605_v54 = vmul.f32 %v914_v36, %v404_v53  ;;  %v619_v36 = vld [vmem:[#allocation2 + $0x8] sm:$0xff] }
 0x21b   :  { %608 = vadd.xlane.f32.xlu1 %v605_v54 }
 0x234   :  { %677 = vrot.lane.b32.xlu1 %v1156_v38, %s939_s8 }
 0x26f   :  { %v541_v0 = vpop.f32.mrf.mxu2 }
 0x270   :  { %v542_v5 = vadd.f32 %v913_v58, %v541_v0 }
 0x272   :  { %546 = vmax.xlane.f32.xlu2 %v542_v5  ;;  %v576_v33 = vsel %vm574_vm6, %v542_v5, 0.0 }
 0x277   :  { %v543_v15 = vpop.f32.mrf.mxu2 }
 0x278   :  { %v544_v17 = vadd.f32 %v913_v58, %v543_v15  ;;  %v903_v58 = vpop.permute.xlu1 %902 }
 0x279   :  { %v905_v59 = vunpack.i.h.bf16 %v903_v58 }
 0x27a   :  { %548 = vmax.xlane.f32.xlu2 %v544_v17  ;;  %v577_v45 = vsel %vm575_vm11, %v544_v17, 0.0 }
 0x27b   :  { %v599_v60 = vmul.f32 %v905_v59, %v1161_v39 }
 0x282   :  { %578 = vadd.xlane.f32.xlu2 %v576_v33  ;;  %v618_v33 = vld [vmem:[#allocation2] sm:$0xff] }
 0x28a   :  { %606 = vadd.xlane.f32.xlu2 %v604_v43 }
 0x28e   :  { %v609_v4 = vpop.xlane.xlu1 %608 }
 0x28f   :  { %v613_v7 = vadd.f32 %v611_v3, %v609_v4  ;;  %v943_v4 = vmov 1  }
 0x291   :  { %v615_v12 = vsub.f32 %v613_v7, %v1161_v39  ;;  %v704_v7 = vshrl.u32 %v566_v13, 7 }
 0x292   :  { %580 = vadd.xlane.f32.xlu2 %v577_v45 }
 0x293   :  { %vm730_vm5 = vcmp.eq.s32.totalorder %v704_v7, 0 }
 0x2a6   :  { %v678_v45 = vpop.permute.xlu1 %677 }
 0x2e5   :  { %v547_v31 = vpop.xlane.xlu2 %546 }
 0x2e6   :  { %v550_v48 = vsub.f32 %v542_v5, %v547_v31  ;;  %v904_v5 = vunpack.i.l.bf16 %v903_v58 }
 0x2e8   :  { %v552_v55 = vmul.f32 1.442695, %v550_v48  ;;  %v598_v10 = vmul.f32 %v904_v5, %v1156_v38 }
 0x2ea   :  { %927 = vpow2.f32 %v552_v55 }
 0x2ed   :  { %v549_v49 = vpop.xlane.xlu2 %548 }
 0x2ee   :  { %v551_v37 = vsub.f32 %v544_v17, %v549_v49  ;;  %v617_v17 = vmul.f32 %v615_v12, %v615_v12 }
 0x2f0   :  { %v928_v56 = vpop.eup %927  ;;  %v554_v57 = vmul.f32 1.442695, %v551_v37 }
 0x2f1   :  { %556 = vadd.xlane.f32.xlu2 %v928_v56 }
 0x2f2   :  { %929 = vpow2.f32 %v554_v57 }
 0x2f5   :  { %v579_v62 = vpop.xlane.xlu2 %578 }
 0x2f8   :  { %v930_v27 = vpop.eup %929 }
 0x2f9   :  { %558 = vadd.xlane.f32.xlu2 %v930_v27 }
 0x2fd   :  { %v607_v63 = vpop.xlane.xlu2 %606 }
 0x2fe   :  { %v612_v22 = vadd.f32 %v611_v3, %v607_v63 }
 0x300   :  { %v614_v23 = vsub.f32 %v612_v22, %v1156_v38 }
 0x302   :  { %v616_v26 = vmul.f32 %v614_v23, %v614_v23 }
 0x304   :  { %v660_v32 = vmul.f32 %v655_v30, %v616_v26 }
 0x305   :  { %v581_v0 = vpop.xlane.xlu2 %580 }
 0x311   :  { %656 = vrot.lane.b32.xlu2 %v1161_v39, %s936_s16 }
 0x319   :  { %641 = vrot.lane.b32.xlu2 %v599_v60, %s936_s16 }
 0x364   :  { %v557_v2 = vpop.xlane.xlu2 %556 }
 0x365   :  { %931 = vlog2.f32 %v557_v2 }
 0x36b   :  { %v932_v6 = vpop.eup %931 }
 0x36c   :  { %v561_v61 = vmul.f32 0.6931472, %v932_v6  ;;  %v559_v8 = vpop.xlane.xlu2 %558 }
 0x36d   :  { %933 = vlog2.f32 %v559_v8 }
 0x36e   :  { %v564_v11 = vadd.f32 %v561_v61, %v547_v31 }
 0x370   :  { %v582_v14 = vsub.f32 %v564_v11, %v579_v62 }
 0x372   :  { %v620_v15 = vmul.f32 %v598_v10, %v582_v14 }
 0x373   :  { %v934_v16 = vpop.eup %933 }
 0x374   :  { %v563_v19 = vmul.f32 0.6931472, %v934_v16  ;;  %v657_v20 = vpop.permute.xlu2 %656  ;;  %624 = vrot.lane.b32.xlu0 %v620_v15, %s940_s21 }
 0x375   :  { %v661_v25 = vmul.f32 %v657_v20, %v617_v17 }
 0x376   :  { %v565_v21 = vadd.f32 %v563_v19, %v549_v49 }
 0x377   :  { %666 = vrot.lane.b32.xlu2 %v661_v25, %s939_s8 }
 0x378   :  { %v583_v1 = vsub.f32 %v565_v21, %v581_v0 }
 0x37a   :  { %v621_v24 = vmul.f32 %v599_v60, %v583_v1 }
 0x37c   :  { %626 = vrot.lane.b32.xlu0 %v621_v24, %s940_s21  ;;  %v642_v47 = vpop.permute.xlu2 %641 }
 0x384   :  { %639 = vrot.lane.b32.xlu0 %v598_v10, %s936_s16 }
 0x38c   :  { %664 = vrot.lane.b32.xlu0 %v660_v32, %s939_s8 }
 0x394   :  { %679 = vrot.lane.b32.xlu0 %v1161_v39, %s939_s8 }
 0x3d1   :  { %v667_v52 = vpop.permute.xlu2 %666 }
 0x3e6   :  { %v625_v38 = vpop.permute.xlu0 %624 }
 0x3e7   :  { %v630_v35 = vadd.f32 %v625_v38, %v618_v33 }
 0x3e9   :  { %633 = vst.msk [vmem:[#allocation2] sm:$0xff] %vm632_vm13, %v630_v35 }
 0x3ee   :  { %v627_v41 = vpop.permute.xlu0 %626 }
 0x3ef   :  { %v631_v9 = vadd.f32 %v627_v41, %v619_v36 }
 0x3f0   :  { %v635_v39 = vld [vmem:[#allocation2] sm:$0xff] }
 0x3f1   :  { %634 = vst.msk [vmem:[#allocation2 + $0x8] sm:$0xff] %vm632_vm13, %v631_v9 }
 0x3f6   :  { %v640_v43 = vpop.permute.xlu0 %639 }
 0x3f7   :  { %v645_v46 = vadd.f32 %v640_v43, %v635_v39 }
 0x3f8   :  { %v636_v28 = vld [vmem:[#allocation2 + $0x8] sm:$0xff] }
 0x3f9   :  { %v646_v44 = vadd.f32 %v642_v47, %v636_v28  ;;  %648 = vst.msk [vmem:[#allocation2] sm:$0xff] %vm647_vm14, %v645_v46 }
 0x3fb   :  { %649 = vst.msk [vmem:[#allocation2 + $0x8] sm:$0xff] %vm647_vm14, %v646_v44 }
 0x3fe   :  { %v665_v51 = vpop.permute.xlu0 %664 }
 0x400   :  { %v650_v50 = vld [vmem:[#allocation2] sm:$0xff] }
 0x401   :  { %v670_v34 = vadd.f32 %v665_v51, %v650_v50 }
 0x402   :  { %v651_v53 = vld [vmem:[#allocation2 + $0x8] sm:$0xff] }
 0x403   :  { %673 = vst.msk [vmem:[#allocation2] sm:$0xff] %vm672_vm15, %v670_v34  ;;  %v671_v54 = vadd.f32 %v667_v52, %v651_v53 }
 0x405   :  { %674 = vst.msk [vmem:[#allocation2 + $0x8] sm:$0xff] %vm672_vm15, %v671_v54 }
 0x406   :  { %v680_v48 = vpop.permute.xlu0 %679 }
 0x40a   :  { %v675_v31 = vld [vmem:[#allocation2] sm:$0xff] }
 0x40b   :  { %v683_v55 = vadd.f32 %v678_v45, %v675_v31 }
 0x40c   :  { %v676_v49 = vld [vmem:[#allocation2 + $0x8] sm:$0xff] }
 0x40d   :  { %686 = vst.msk [vmem:[#allocation2] sm:$0xff] %vm685_vm0, %v683_v55  ;;  %v684_v37 = vadd.f32 %v680_v48, %v676_v49 }
 0x40f   :  { %687 = vst.msk [vmem:[#allocation2 + $0x8] sm:$0xff] %vm685_vm0, %v684_v37 }
 0x414   :  { %v691_v56 = vld [vmem:[#allocation2] sm:$0xff] }
 0x415   :  { %v694_v27 = vsel %vm84_vm12, %v691_v56, 0.0 }
 0x416   :  { %v692_v57 = vld [vmem:[#allocation2 + $0x8] sm:$0xff] }
 0x417   :  { %v695_v58 = vsel %vm84_vm12, %v692_v57, 0.0 }
 0x418   :  { %v696_v59 = vadd.f32 %v695_v58, %v694_v27 }
 0x41a   :  { %v697_v60 = vrot.slane %v696_v59, 4 }
 0x41c   :  { %v698_v62 = vadd.f32 %v697_v60, %v696_v59 }
 0x41e   :  { %v699_v63 = vrot.slane %v698_v62, 2 }
 0x420   :  { %v700_v0 = vadd.f32 %v699_v63, %v698_v62 }
 0x422   :  { %v701_v2 = vrot.slane %v700_v0, 1 }
 0x424   :  { %v702_v3 = vadd.f32 %v701_v2, %v700_v0 }
 0x426   :  { %716 = vperm.xlu0 %907, %v702_v3   ;;  %711 = vperm.xlu2 %906, %v702_v3  }
 0x42e   :  { %908 = vset.pattern.permute.xlu2 %v943_v4  ;;  %910 = vset.pattern.permute.xlu0 %v935_v40 }
 0x42f   :  { %721 = vperm.xlu2 %908, %v702_v3  }
 0x437   :  { %909 = vset.pattern.permute.xlu2 %v935_v40 }
 0x438   :  { %726 = vperm.xlu2 %909, %v702_v3  }
 0x480   :  { %v712_v5 = vpop.permute.xlu2 %711 }
 0x481   :  { %v714_v61 = vsel %vm708_vm1, %v712_v5, 0.0 }
 0x489   :  { %v722_v6 = vpop.permute.xlu2 %721 }
 0x492   :  { %v727_v11 = vpop.permute.xlu2 %726 }
 0x498   :  { %v717_v8 = vpop.permute.xlu0 %716 }
 0x499   :  { %v719_v10 = vsel %vm707_vm2, %v717_v8, %v714_v61 }
 0x49a   :  { %v724_v12 = vsel %vm706_vm3, %v722_v6, %v719_v10 }
 0x49b   :  { %v729_v40 = vsel %vm705_vm4, %v727_v11, %v724_v12 }
 0x49c   :  { %v731_v14 = vsel %vm730_vm5, %v729_v40, 0.0 }
 0x49d   :  { %732 = vst [vmem:[%s1270_s10] sm:$0xff] %v731_v14 }

// kernel: _mcm_loss.1
= control target key start
LH: loop header
LB: loop body
LE: loop exit
PB: predicated region body
PF: predicated region fallthrough
CT: control target
= control target key end

     0   :  { %s936_s16 = smov 127   ;;  %s940_s21 = smov 126   ;;  %s1260_s2 = inlined_call_operand.vmem [shape: bf16[128,256], index: 2, kind: input, shape index: {}]   ;;  %s1261_s1 = inlined_call_operand.vmem [shape: bf16[16,128], index: 1, kind: input, shape index: {}]   ;;  %s1262_s3 = inlined_call_operand.vmem [shape: f32[1,256], index: 3, kind: input, shape index: {}]   ;;  %s1263_s4 = inlined_call_operand.vmem [shape: f32[1,128], index: 4, kind: input, shape index: {}]   ;;  %s1264_s5 = inlined_call_operand.vmem [shape: f32[1,128], index: 5, kind: input, shape index: {}]   ;;  %s1265_s6 = inlined_call_operand.vmem [shape: bf16[128,128], index: 6, kind: input, shape index: {}]   ;;  %s1266_s0 = inlined_call_operand.vmem [shape: f32[16,8], index: 0, kind: input, shape index: {}]   ;;  %s1267_s7 = inlined_call_operand.vmem [shape: f32[1,128], index: 7, kind: input, shape index: {}]   ;;  %s1268_s8 = inlined_call_operand.vmem [shape: f32[1,128], index: 8, kind: input, shape index: {}]   ;;  %s1269_s9 = inlined_call_operand.<no memory space> [shape: f32[1], index: 9, kind: input, shape index: {}]   ;;  %s1270_s10 = inlined_call_operand.vmem [shape: f32[8,128], index: 10, kind: output, shape index: {}]  }
   0x1   :  { %v811_v0 = vld [vmem:[%s1260_s2 + $0x70] sm:$0xf]  ;;  %v871_v1 = vld [vmem:[%s1260_s2 + $0x74] sm:$0xf0]  ;;  %v803_v2 = vld [vmem:[%s1260_s2 + $0x60] sm:$0xf] }
   0x2   :  { %v812_v3 = vor.u32 %v871_v1, %v811_v0  ;;  %v869_v4 = vld [vmem:[%s1260_s2 + $0x64] sm:$0xf0]  ;;  %v795_v6 = vld [vmem:[%s1260_s2 + $0x50] sm:$0xf]  ;;  %v867_v7 = vld [vmem:[%s1260_s2 + $0x54] sm:$0xf0] }
   0x3   :  { %v804_v5 = vor.u32 %v869_v4, %v803_v2  ;;  %v796_v8 = vor.u32 %v867_v7, %v795_v6  ;;  %v787_v9 = vld [vmem:[%s1260_s2 + $0x40] sm:$0xf]  ;;  %v865_v10 = vld [vmem:[%s1260_s2 + $0x44] sm:$0xf0]  ;;  %v779_v12 = vld [vmem:[%s1260_s2 + $0x30] sm:$0xf] }
   0x4   :  { %201 = vmatpush.bf16.msra.mxu0 %v812_v3  ;;  %v788_v11 = vor.u32 %v865_v10, %v787_v9  ;;  %v863_v13 = vld [vmem:[%s1260_s2 + $0x34] sm:$0xf0]  ;;  %v771_v15 = vld [vmem:[%s1260_s2 + $0x20] sm:$0xf]  ;;  %v861_v16 = vld [vmem:[%s1260_s2 + $0x24] sm:$0xf0] }
   0x5   :  { %v780_v14 = vor.u32 %v863_v13, %v779_v12  ;;  %v772_v17 = vor.u32 %v861_v16, %v771_v15  ;;  %v763_v18 = vld [vmem:[%s1260_s2 + $0x10] sm:$0xf]  ;;  %v859_v19 = vld [vmem:[%s1260_s2 + $0x14] sm:$0xf0]  ;;  %v755_v21 = vld [vmem:[%s1260_s2] sm:$0xf] }
   0x6   :  { %v764_v20 = vor.u32 %v859_v19, %v763_v18  ;;  %v857_v22 = vld [vmem:[%s1260_s2 + $0x4] sm:$0xf0]  ;;  %v1050_v24 = vld [vmem:[%s1261_s1] sm:$0xff] }
   0x7   :  { %v756_v23 = vor.u32 %v857_v22, %v755_v21  ;;  %v1056_v25 = vld [vmem:[%s1262_s3] sm:$0x3] }
   0x8   :  { %202 = vmatpush.bf16.msra.mxu0 %v804_v5  ;;  %v111_v26 = vperm.slane %v1056_v25, 0 }
   0xc   :  { %203 = vmatpush.bf16.msra.mxu0 %v796_v8 }
  0x10   :  { %204 = vmatpush.bf16.msra.mxu0 %v788_v11 }
  0x14   :  { %205 = vmatpush.bf16.msra.mxu0 %v780_v14 }
  0x18   :  { %206 = vmatpush.bf16.msra.mxu0 %v772_v17 }
  0x1c   :  { %207 = vmatpush.bf16.msra.mxu0 %v764_v20 }
  0x20   :  { %208 = vmatpush.bf16.msra.mxu0 %v756_v23 }
  0x23   :  { %209 = vmatmul.bf16.vlgmr.msra.gmra.mxu0 %v1050_v24 }
  0xa0   :  { %v210_v27 = vpop.f32.mrf.mxu0 }
  0xa1   :  { %v1059_v28 = vadd.f32 %v210_v27, %v111_v26 }
  0xa3   :  { %v233_v29 = vmul.f32 0.70710677, %v1059_v28 }
  0xa5   :  { %v237_v30 = vmul.f32 %v233_v29, %v233_v29 }
  0xa7   :  { %v238_v31 = vmin.f32 %v237_v30, 16.0 }
  0xa8   :  { %v212_v32 = vpop.f32.mrf.mxu0 }
  0xa9   :  { %v239_v33 = vmul.f32 2.1237322e-06, %v238_v31  ;;  %v1062_v34 = vadd.f32 %v212_v32, %v111_v26  ;;  %v250_v35 = vmul.f32 3.8918573e-05, %v238_v31 }
  0xab   :  { %v240_v36 = vadd.f32 0.00028619796, %v239_v33  ;;  %v1065_v37 = vmul.f32 0.70710677, %v1062_v34  ;;  %v251_v38 = vadd.f32 0.001143296, %v250_v35 }
  0xad   :  { %v241_v39 = vmul.f32 %v240_v36, %v238_v31  ;;  %v317_v40 = vmul.f32 %v1065_v37, %v1065_v37  ;;  %v252_v41 = vmul.f32 %v251_v38, %v238_v31 }
  0xaf   :  { %v318_v42 = vmin.f32 %v317_v40, 16.0  ;;  %v253_v43 = vadd.f32 0.014752088, %v252_v41  ;;  %v242_v44 = vadd.f32 0.0036580483, %v241_v39  ;;  %v229_v39 = vmul.f32 0.5, %v1059_v28 }
  0xb0   :  { %v870_v28 = vld [vmem:[%s1260_s2 + $0x74] sm:$0xf] }
  0xb1   :  { %v319_v45 = vmul.f32 2.1237322e-06, %v318_v42  ;;  %v330_v46 = vmul.f32 3.8918573e-05, %v318_v42  ;;  %v254_v47 = vmul.f32 %v253_v43, %v238_v31  ;;  %v243_v51 = vmul.f32 %v242_v44, %v238_v31 }
  0xb3   :  { %v320_v48 = vadd.f32 0.00028619796, %v319_v45  ;;  %v331_v49 = vadd.f32 0.001143296, %v330_v46  ;;  %v255_v50 = vadd.f32 0.112945676, %v254_v47 }
  0xb4   :  { %v244_v58 = vadd.f32 0.05243302, %v243_v51  ;;  %v231_v47 = vmul.f32 0.5, %v1062_v34  ;;  %v805_v34 = vld [vmem:[%s1260_s2 + $0x68] sm:$0xf0] }
  0xb5   :  { %v321_v52 = vmul.f32 %v320_v48, %v318_v42  ;;  %v332_v53 = vmul.f32 %v331_v49, %v318_v42  ;;  %v256_v54 = vmul.f32 %v255_v50, %v238_v31  ;;  %v868_v50 = vld [vmem:[%s1260_s2 + $0x64] sm:$0xf] }
  0xb6   :  { %v245_v0 = vmul.f32 %v244_v58, %v238_v31 }
  0xb7   :  { %v333_v55 = vadd.f32 0.014752088, %v332_v53  ;;  %v322_v56 = vadd.f32 0.0036580483, %v321_v52  ;;  %v257_v57 = vadd.f32 0.4994258, %v256_v54  ;;  %v808_v52 = vor.u32 %v868_v50, %v805_v34 }
  0xb8   :  { %v246_v4 = vadd.f32 0.18741608, %v245_v0  ;;  %v866_v53 = vld [vmem:[%s1260_s2 + $0x54] sm:$0xf]  ;;  %v797_v54 = vld [vmem:[%s1260_s2 + $0x58] sm:$0xf0] }
  0xb9   :  { %v334_v59 = vmul.f32 %v333_v55, %v318_v42  ;;  %v258_v60 = vmul.f32 %v257_v57, %v238_v31  ;;  %v323_v62 = vmul.f32 %v322_v56, %v318_v42  ;;  %v800_v55 = vor.u32 %v866_v53, %v797_v54  ;;  %v864_v56 = vld [vmem:[%s1260_s2 + $0x44] sm:$0xf]  ;;  %v789_v57 = vld [vmem:[%s1260_s2 + $0x48] sm:$0xf0] }
  0xba   :  { %v247_v9 = vmul.f32 %v246_v4, %v238_v31  ;;  %v792_v58 = vor.u32 %v864_v56, %v789_v57  ;;  %v781_v4 = vld [vmem:[%s1260_s2 + $0x38] sm:$0xf0] }
  0xbb   :  { %v335_v61 = vadd.f32 0.112945676, %v334_v59  ;;  %v259_v63 = vadd.f32 1.0, %v258_v60  ;;  %v324_v3 = vadd.f32 0.05243302, %v323_v62 }
  0xbc   :  { %v248_v14 = vadd.f32 1.1283791, %v247_v9  ;;  %v879_v9 = vld [vmem:[%s1265_s6 + $0x38] sm:$0xff] }
  0xbd   :  { %v336_v1 = vmul.f32 %v335_v61, %v318_v42  ;;  %915 = vrcp.f32 %v259_v63  ;;  %v325_v8 = vmul.f32 %v324_v3, %v318_v42  ;;  %v271_v13 = vand.u32 2147483648, %v259_v63  ;;  %v862_v3 = vld [vmem:[%s1260_s2 + $0x34] sm:$0xf]  ;;  %532 = vmatpush.bf16.msra.mxu2 %v879_v9 }
  0xbe   :  { %v269_v16 = vand.u32 2147483647, %v259_v63  ;;  %vm265_vm1 = vweird.f32 %v259_v63  ;;  %v249_v22 = vmul.f32 %v248_v14, %v233_v29  ;;  %v856_v14 = vld [vmem:[%s1260_s2 + $0x4] sm:$0xf] }
  0xbf   :  { %v337_v2 = vadd.f32 0.4994258, %v336_v1  ;;  %v326_v12 = vadd.f32 0.18741608, %v325_v8  ;;  %v272_v20 = vor.u32 1.1754944e-38, %v271_v13  ;;  %v878_v13 = vld [vmem:[%s1265_s6 + $0x30] sm:$0xff] }
  0xc0   :  { %vm270_vm3 = vcmp.eq.f32.partialorder %v269_v16, 8.507059e+37 }
  0xc1   :  { %v338_v5 = vmul.f32 %v337_v2, %v318_v42  ;;  %v327_v19 = vmul.f32 %v326_v12, %v318_v42  ;;  %533 = vmatpush.bf16.msra.mxu2 %v878_v13 }
  0xc3   :  { %v339_v6 = vadd.f32 1.0, %v338_v5  ;;  %v916_v7 = vpop.eup %915  ;;  %v328_v32 = vadd.f32 1.1283791, %v327_v19  ;;  %v784_v5 = vor.u32 %v862_v3, %v781_v4  ;;  %v875_v19 = vld [vmem:[%s1265_s6 + $0x18] sm:$0xff]  ;;  %v912_v3 = vld [vmem:[%s1264_s5] ss:$0 sm:$0xff] }
  0xc4   :  { %v261_v10 = vmul.f32 %v916_v7, %v259_v63  ;;  %vm266_vm0 = vweird.f32 %v916_v7 }
  0xc5   :  { %917 = vrcp.f32 %v339_v6  ;;  %vm267_vm2 = vmor %vm265_vm1, %vm266_vm0  ;;  %v351_v31 = vand.u32 2147483648, %v339_v6  ;;  %v349_v35 = vand.u32 2147483647, %v339_v6  ;;  %vm345_vm5 = vweird.f32 %v339_v6 }
  0xc6   :  { %v262_v11 = vsub.f32 1.0, %v261_v10  ;;  %v329_v29 = vmul.f32 %v328_v32, %v1065_v37  ;;  %v813_v37 = vld [vmem:[%s1260_s2 + $0x78] sm:$0xf0]  ;;  %v858_v10 = vld [vmem:[%s1260_s2 + $0x14] sm:$0xf] }
  0xc7   :  { %v352_v41 = vor.u32 1.1754944e-38, %v351_v31  ;;  %vm350_vm7 = vcmp.eq.f32.partialorder %v349_v35, 8.507059e+37  ;;  %v816_v51 = vor.u32 %v870_v28, %v813_v37 }
  0xc8   :  { %v263_v15 = vmul.f32 %v916_v7, %v262_v11  ;;  %v765_v11 = vld [vmem:[%s1260_s2 + $0x18] sm:$0xf0] }
  0xc9   :  { %215 = vmatpush.bf16.msra.mxu1 %v816_v51  ;;  %v768_v12 = vor.u32 %v858_v10, %v765_v11 }
  0xca   :  { %v264_v18 = vadd.f32 %v916_v7, %v263_v15  ;;  %v757_v15 = vld [vmem:[%s1260_s2 + $0x8] sm:$0xf0] }
  0xcb   :  { %v918_v17 = vpop.eup %917  ;;  %v760_v16 = vor.u32 %v856_v14, %v757_v15 }
  0xcc   :  { %v341_v21 = vmul.f32 %v918_v17, %v339_v6  ;;  %v268_v23 = vsel %vm267_vm2, %v916_v7, %v264_v18  ;;  %vm346_vm4 = vweird.f32 %v918_v17  ;;  %v860_v6 = vld [vmem:[%s1260_s2 + $0x24] sm:$0xf]  ;;  %v773_v7 = vld [vmem:[%s1260_s2 + $0x28] sm:$0xf0] }
  0xcd   :  { %v273_v26 = vsel %vm270_vm3, %v272_v20, %v268_v23  ;;  %vm347_vm6 = vmor %vm345_vm5, %vm346_vm4  ;;  %216 = vmatpush.bf16.msra.mxu1 %v808_v52  ;;  %v776_v8 = vor.u32 %v860_v6, %v773_v7  ;;  %v876_v18 = vld [vmem:[%s1265_s6 + $0x20] sm:$0xff] }
  0xce   :  { %v342_v27 = vsub.f32 1.0, %v341_v21  ;;  %v274_v30 = vmul.f32 %v273_v26, %v249_v22  ;;  %v874_v21 = vld [vmem:[%s1265_s6 + $0x10] sm:$0xff] }
  0xd0   :  { %v343_v33 = vmul.f32 %v918_v17, %v342_v27  ;;  %v817_v36 = vclamps-f32 %v274_v30, 1.0  ;;  %v872_v27 = vld [vmem:[%s1265_s6] sm:$0xff] }
  0xd1   :  { %217 = vmatpush.bf16.msra.mxu1 %v800_v55 }
  0xd2   :  { %v344_v38 = vadd.f32 %v918_v17, %v343_v33  ;;  %v397_v40 = vadd.f32 1.0, %v817_v36 }
  0xd4   :  { %v348_v42 = vsel %vm347_vm6, %v918_v17, %v344_v38  ;;  %v401_v43 = vmul.f32 %v397_v40, %v229_v39  ;;  %v877_v17 = vld [vmem:[%s1265_s6 + $0x28] sm:$0xff]  ;;  %v1156_v38 = vld [vmem:[%s1266_s0] sm:$0xff]  ;;  %v935_v40 = vmov 0  }
  0xd5   :  { %v353_v44 = vsel %vm350_vm7, %v352_v41, %v348_v42  ;;  %218 = vmatpush.bf16.msra.mxu1 %v792_v58  ;;  %534 = vmatpush.bf16.msra.mxu2 %v877_v17  ;;  %v1161_v39 = vld [vmem:[%s1266_s0 + $0x8] sm:$0xff]  ;;  %vm880_vm8 = vcmp.lt.s32.totalorder %v1156_v38, 0  ;;  %v881_v41 = vceil.f32 %v1156_v38 }
  0xd6   :  { %v354_v45 = vmul.f32 %v353_v44, %v329_v29  ;;  %405 = vadd.xlane.f32.xlu0 %v401_v43  ;;  %v882_v29 = vfloor.f32 %v1156_v38  ;;  %900 = vset.pattern.permute.xlu1 %v935_v40  ;;  %vm885_vm9 = vcmp.lt.s32.totalorder %v1161_v39, 0  ;;  %v887_v44 = vfloor.f32 %v1161_v39 }
  0xd7   :  { %899 = vset.pattern.permute.xlu0 %v935_v40 }
  0xd8   :  { %v819_v46 = vclamps-f32 %v354_v45, 1.0  ;;  %v1171_v45 = vsel %vm880_vm8, %v881_v41, %v882_v29 }
  0xd9   :  { %219 = vmatpush.bf16.msra.mxu1 %v784_v5  ;;  %535 = vmatpush.bf16.msra.mxu2 %v876_v18 }
  0xda   :  { %v399_v48 = vadd.f32 1.0, %v819_v46 }
  0xdc   :  { %v403_v49 = vmul.f32 %v399_v48, %v231_v47  ;;  %v884_v48 = vcvt.f32.s32 %v1171_v45 }
  0xdd   :  { %220 = vmatpush.bf16.msra.mxu1 %v776_v8  ;;  %536 = vmatpush.bf16.msra.mxu2 %v875_v19 }
  0xde   :  { %407 = vadd.xlane.f32.xlu0 %v403_v49  ;;  %vm584_vm0 = vcmp.ne.s32.totalorder %v884_v48, 0 }
  0xe1   :  { %221 = vmatpush.bf16.msra.mxu1 %v768_v12  ;;  %537 = vmatpush.bf16.msra.mxu2 %v874_v21 }
  0xe5   :  { %222 = vmatpush.bf16.msra.mxu1 %v760_v16 }
  0xe8   :  { %223 = vmatmul.bf16.vlgmr.msra.gmra.mxu1 %v1050_v24  ;;  %v873_v24 = vld [vmem:[%s1265_s6 + $0x8] sm:$0xff] }
  0xe9   :  { %538 = vmatpush.bf16.msra.mxu2 %v873_v24 }
  0xed   :  { %539 = vmatpush.bf16.msra.mxu2 %v872_v27 }
  0xf2   :  { %569 = vperm.xlu0 %899, %v884_v48  }
  0xfa   :  { %654 = vrot.lane.b32.xlu0 %v1156_v38, %s936_s16 }
 0x149   :  { %v406_v59 = vpop.xlane.xlu0 %405 }
 0x14a   :  { %v409_v60 = vmul.f32 0.03125, %v406_v59 }
 0x14c   :  { %v1096_v61 = vsub.f32 %v401_v43, %v409_v60  ;;  %v419_v20 = vmul.f32 %v409_v60, %v409_v60  ;;  %v886_v43 = vceil.f32 %v1161_v39  ;;  %v911_v60 = vld [vmem:[%s1263_s4] ss:$0 sm:$0xff]  ;;  %s938_s4 = smov 2  }
 0x14e   :  { %v413_v62 = vmul.f32 %v1096_v61, %v1096_v61  ;;  %v421_v22 = vmul.f32 96.0, %v419_v20 }
 0x150   :  { %415 = vadd.xlane.f32.xlu1 %v413_v62 }
 0x151   :  { %v408_v63 = vpop.xlane.xlu0 %407 }
 0x152   :  { %v410_v0 = vmul.f32 0.03125, %v408_v63 }
 0x154   :  { %v1100_v1 = vsub.f32 %v403_v49, %v410_v0  ;;  %v420_v30 = vmul.f32 %v410_v0, %v410_v0  ;;  %v1174_v49 = vsel %vm885_vm9, %v886_v43, %v887_v44  ;;  %v937_v44 = vmov 0.0  }
 0x155   :  { %v889_v37 = vcvt.f32.s32 %v1174_v49 }
 0x156   :  { %v414_v2 = vmul.f32 %v1100_v1, %v1100_v1  ;;  %v422_v33 = vmul.f32 96.0, %v420_v30 }
 0x157   :  { %vm585_vm1 = vcmp.ne.s32.totalorder %v889_v37, 0 }
 0x158   :  { %417 = vadd.xlane.f32.xlu1 %v414_v2 }
 0x165   :  { %v224_v8 = vpop.f32.mrf.mxu1 }
 0x171   :  { %572 = vperm.xlu1 %900, %v889_v37  }
 0x1c3   :  { %v416_v23 = vpop.xlane.xlu1 %415 }
 0x1c4   :  { %v423_v26 = vsub.f32 %v416_v23, %v421_v22 }
 0x1c6   :  { %v425_v31 = vmul.f32 0.03125, %v423_v26  ;;  %v226_v26 = vpop.f32.mrf.mxu1 }
 0x1c8   :  { %v427_v32 = vadd.f32 1e-05, %v425_v31 }
 0x1ca   :  { %919 = vrsqrt.f32 %v427_v32  ;;  %vm435_vm11 = vweird.f32 %v427_v32 }
 0x1cb   :  { %v418_v35 = vpop.xlane.xlu1 %417 }
 0x1cc   :  { %v424_v36 = vsub.f32 %v418_v35, %v422_v33 }
 0x1ce   :  { %v426_v42 = vmul.f32 0.03125, %v424_v36 }
 0x1d0   :  { %v920_v46 = vpop.eup %919  ;;  %v428_v47 = vadd.f32 1e-05, %v426_v42 }
 0x1d1   :  { %v430_v28 = vmul.f32 %v920_v46, %v427_v32  ;;  %vm436_vm10 = vweird.f32 %v920_v46 }
 0x1d2   :  { %921 = vrsqrt.f32 %v428_v47  ;;  %vm437_vm12 = vmor %vm435_vm11, %vm436_vm10  ;;  %vm445_vm14 = vweird.f32 %v428_v47 }
 0x1d3   :  { %v431_v50 = vmul.f32 %v920_v46, %v430_v28 }
 0x1d5   :  { %v432_v51 = vmul.f32 0.5, %v431_v50 }
 0x1d7   :  { %v433_v34 = vsub.f32 1.5, %v432_v51 }
 0x1d8   :  { %v922_v52 = vpop.eup %921 }
 0x1d9   :  { %v434_v53 = vmul.f32 %v920_v46, %v433_v34  ;;  %v440_v54 = vmul.f32 %v922_v52, %v428_v47  ;;  %vm446_vm13 = vweird.f32 %v922_v52  ;;  %v854_v47 = vsel %vm585_vm1, 1.0, %v937_v44 }
 0x1da   :  { %vm447_vm15 = vmor %vm445_vm14, %vm446_vm13  ;;  %vm632_vm13 = vcmask 7168   ;;  %vm647_vm14 = vcmask 15368  }
 0x1db   :  { %v441_v55 = vmul.f32 %v922_v52, %v440_v54  ;;  %v438_v57 = vsel %vm437_vm12, %v920_v46, %v434_v53  ;;  %v853_v46 = vsel %vm584_vm0, 1.0, %v937_v44  ;;  %vm84_vm12 = vcmask 31744  }
 0x1dc   :  { %v449_v59 = vmul.f32 %v438_v57, %v1096_v61  ;;  %v112_v61 = vperm.slane %v1056_v25, 1  ;;  %v901_v50 = vpack.i.bf16 %v854_v47, %v853_v46  ;;  %85 = vst.msk [vmem:[#allocation2] sm:$0xff] %vm84_vm12, %v937_v44  ;;  %vm685_vm0 = vcmask 31768  }
 0x1dd   :  { %v442_v56 = vmul.f32 0.5, %v441_v55  ;;  %86 = vst.msk [vmem:[#allocation2 + $0x8] sm:$0xff] %vm84_vm12, %v937_v44 }
 0x1de   :  { %v455_v2 = vmul.f32 %v911_v60, %v449_v59  ;;  %v1192_v9 = vadd.f32 %v224_v8, %v112_v61  ;;  %v1199_v27 = vadd.f32 %v226_v26, %v112_v61  ;;  %902 = vrot.lane.b32.xlu1 %v901_v50, %s938_s4 }
 0x1df   :  { %v443_v58 = vsub.f32 1.5, %v442_v56 }
 0x1e0   :  { %v461_v5 = vadd.f32 %v912_v3, %v455_v2  ;;  %v1202_v31 = vmul.f32 0.70710677, %v1199_v27  ;;  %v232_v50 = vmul.f32 0.5, %v1199_v27 }
 0x1e1   :  { %v444_v62 = vmul.f32 %v922_v52, %v443_v58  ;;  %v913_v58 = vld [vmem:[%s1267_s7] ss:$0 sm:$0xff] }
 0x1e2   :  { %v357_v33 = vmul.f32 %v1202_v31, %v1202_v31 }
 0x1e3   :  { %v448_v63 = vsel %vm447_vm15, %v922_v52, %v444_v62  ;;  %vm672_vm15 = vcmask 23568  }
 0x1e4   :  { %v450_v0 = vmul.f32 %v448_v63, %v1100_v1  ;;  %v1195_v1 = vmul.f32 0.70710677, %v1192_v9  ;;  %v358_v36 = vmin.f32 %v357_v33, 16.0 }
 0x1e6   :  { %v456_v4 = vmul.f32 %v911_v60, %v450_v0  ;;  %v277_v10 = vmul.f32 %v1195_v1, %v1195_v1  ;;  %v359_v29 = vmul.f32 2.1237322e-06, %v358_v36  ;;  %v370_v28 = vmul.f32 3.8918573e-05, %v358_v36 }
 0x1e8   :  { %v462_v6 = vadd.f32 %v912_v3, %v456_v4  ;;  %v278_v11 = vmin.f32 %v277_v10, 16.0  ;;  %v360_v43 = vadd.f32 0.00028619796, %v359_v29  ;;  %v371_v52 = vadd.f32 0.001143296, %v370_v28 }
 0x1ea   :  { %v463_v7 = vpack.c.bf16 %v462_v6, %v461_v5  ;;  %v290_v12 = vmul.f32 3.8918573e-05, %v278_v11  ;;  %v279_v19 = vmul.f32 2.1237322e-06, %v278_v11  ;;  %v361_v34 = vmul.f32 %v360_v43, %v358_v36 }
 0x1eb   :  { %v372_v45 = vmul.f32 %v371_v52, %v358_v36 }
 0x1ec   :  { %540 = vmatmul.bf16.vlgmr.msra.gmra.mxu2 %v463_v7  ;;  %v291_v13 = vadd.f32 0.001143296, %v290_v12  ;;  %v280_v25 = vadd.f32 0.00028619796, %v279_v19  ;;  %v362_v54 = vadd.f32 0.0036580483, %v361_v34  ;;  %v573_v34 = vpop.permute.xlu1 %572 }
 0x1ed   :  { %v373_v55 = vadd.f32 0.014752088, %v372_v45 }
 0x1ee   :  { %v292_v14 = vmul.f32 %v291_v13, %v278_v11  ;;  %v281_v24 = vmul.f32 %v280_v25, %v278_v11  ;;  %v363_v37 = vmul.f32 %v362_v54, %v358_v36  ;;  %v566_v13 = vlaneseq }
 0x1ef   :  { %v374_v57 = vmul.f32 %v373_v55, %v358_v36 }
 0x1f0   :  { %v293_v15 = vadd.f32 0.014752088, %v292_v14  ;;  %v282_v23 = vadd.f32 0.0036580483, %v281_v24  ;;  %v364_v2 = vadd.f32 0.05243302, %v363_v37 }
 0x1f1   :  { %v375_v62 = vadd.f32 0.112945676, %v374_v57 }
 0x1f2   :  { %v294_v16 = vmul.f32 %v293_v15, %v278_v11  ;;  %v283_v30 = vmul.f32 %v282_v23, %v278_v11  ;;  %v365_v8 = vmul.f32 %v364_v2, %v358_v36 }
 0x1f3   :  { %v376_v4 = vmul.f32 %v375_v62, %v358_v36 }
 0x1f4   :  { %v295_v17 = vadd.f32 0.112945676, %v294_v16  ;;  %v284_v35 = vadd.f32 0.05243302, %v283_v30  ;;  %v366_v16 = vadd.f32 0.18741608, %v365_v8 }
 0x1f5   :  { %v377_v7 = vadd.f32 0.4994258, %v376_v4 }
 0x1f6   :  { %v296_v18 = vmul.f32 %v295_v17, %v278_v11  ;;  %v285_v42 = vmul.f32 %v284_v35, %v278_v11  ;;  %v367_v25 = vmul.f32 %v366_v16, %v358_v36 }
 0x1f8   :  { %v297_v20 = vadd.f32 0.4994258, %v296_v18  ;;  %v286_v53 = vadd.f32 0.18741608, %v285_v42  ;;  %v1217_v18 = vand.u32 127, %v566_v13 }
 0x1f9   :  { %v368_v23 = vadd.f32 1.1283791, %v367_v25 }
 0x1fa   :  { %v298_v21 = vmul.f32 %v297_v20, %v278_v11  ;;  %v287_v49 = vmul.f32 %v286_v53, %v278_v11  ;;  %v378_v11 = vmul.f32 %v377_v7, %v358_v36  ;;  %v570_v20 = vpop.permute.xlu0 %569  ;;  %v914_v36 = vld [vmem:[%s1268_s8] ss:$0 sm:$0xff]  ;;  %vm575_vm11 = vcmp.eq.s32.totalorder %v1217_v18, %v573_v34  ;;  %s939_s8 = smov 1  }
 0x1fb   :  { %vm574_vm6 = vcmp.eq.s32.totalorder %v1217_v18, %v570_v20  ;;  %v369_v29 = vmul.f32 %v368_v23, %v1202_v31  ;;  %vm708_vm1 = vcmp.eq.s32.totalorder %v1217_v18, 3 }
 0x1fc   :  { %v299_v22 = vadd.f32 1.0, %v298_v21  ;;  %v288_v63 = vadd.f32 1.1283791, %v287_v49  ;;  %v379_v12 = vadd.f32 1.0, %v378_v11 }
 0x1fe   :  { %923 = vrcp.f32 %v299_v22  ;;  %vm305_vm2 = vweird.f32 %v299_v22  ;;  %v311_v56 = vand.u32 2147483648, %v299_v22  ;;  %v309_v60 = vand.u32 2147483647, %v299_v22 }
 0x1ff   :  { %v289_v61 = vmul.f32 %v288_v63, %v1195_v1  ;;  %925 = vrcp.f32 %v379_v12  ;;  %v230_v1 = vmul.f32 0.5, %v1192_v9  ;;  %v391_v26 = vand.u32 2147483648, %v379_v12 }
 0x200   :  { %v312_v3 = vor.u32 1.1754944e-38, %v311_v56  ;;  %vm310_vm5 = vcmp.eq.f32.partialorder %v309_v60, 8.507059e+37  ;;  %vm385_vm7 = vweird.f32 %v379_v12 }
 0x201   :  { %v392_v9 = vor.u32 1.1754944e-38, %v391_v26 }
 0x204   :  { %v924_v32 = vpop.eup %923 }
 0x205   :  { %v301_v41 = vmul.f32 %v924_v32, %v299_v22  ;;  %vm306_vm3 = vweird.f32 %v924_v32  ;;  %v926_v21 = vpop.eup %925 }
 0x206   :  { %vm307_vm4 = vmor %vm305_vm2, %vm306_vm3  ;;  %v381_v22 = vmul.f32 %v926_v21, %v379_v12  ;;  %vm386_vm8 = vweird.f32 %v926_v21  ;;  %vm707_vm2 = vcmp.eq.s32.totalorder %v1217_v18, 2  ;;  %vm706_vm3 = vcmp.eq.s32.totalorder %v1217_v18, 1 }
 0x207   :  { %v302_v51 = vsub.f32 1.0, %v301_v41  ;;  %vm387_vm9 = vmor %vm385_vm7, %vm386_vm8 }
 0x208   :  { %v382_v30 = vsub.f32 1.0, %v381_v22 }
 0x209   :  { %v303_v48 = vmul.f32 %v924_v32, %v302_v51 }
 0x20a   :  { %v383_v41 = vmul.f32 %v926_v21, %v382_v30  ;;  %v655_v30 = vpop.permute.xlu0 %654 }
 0x20b   :  { %v304_v59 = vadd.f32 %v924_v32, %v303_v48 }
 0x20c   :  { %v384_v42 = vadd.f32 %v926_v21, %v383_v41 }
 0x20d   :  { %v308_v6 = vsel %vm307_vm4, %v924_v32, %v304_v59  ;;  %v389_v32 = vand.u32 2147483647, %v379_v12  ;;  %vm705_vm4 = vcmp.eq.s32.totalorder %v1217_v18, 0 }
 0x20e   :  { %v313_v10 = vsel %vm310_vm5, %v312_v3, %v308_v6  ;;  %v388_v46 = vsel %vm387_vm9, %v926_v21, %v384_v42  ;;  %v611_v3 = vstv %s1269_s9  ;;  %v942_v42 = vmov 2  }
 0x20f   :  { %v314_v14 = vmul.f32 %v313_v10, %v289_v61  ;;  %vm390_vm10 = vcmp.eq.f32.partialorder %v389_v32, 8.507059e+37  ;;  %907 = vset.pattern.permute.xlu0 %v942_v42 }
 0x210   :  { %v393_v47 = vsel %vm390_vm10, %v392_v9, %v388_v46 }
 0x211   :  { %v818_v19 = vclamps-f32 %v314_v14, 1.0  ;;  %v394_v28 = vmul.f32 %v393_v47, %v369_v29  ;;  %v941_v29 = vmov 3  }
 0x212   :  { %906 = vset.pattern.permute.xlu2 %v941_v29 }
 0x213   :  { %v398_v24 = vadd.f32 1.0, %v818_v19  ;;  %v820_v51 = vclamps-f32 %v394_v28, 1.0 }
 0x215   :  { %v402_v35 = vmul.f32 %v398_v24, %v230_v1  ;;  %v400_v52 = vadd.f32 1.0, %v820_v51 }
 0x217   :  { %v604_v43 = vmul.f32 %v914_v36, %v402_v35  ;;  %v404_v53 = vmul.f32 %v400_v52, %v232_v50 }
 0x219   :  { %v605_v54 = vmul.f32 %v914_v36, %v404_v53  ;;  %v619_v36 = vld [vmem:[#allocation2 + $0x8] sm:$0xff] }
 0x21b   :  { %608 = vadd.xlane.f32.xlu1 %v605_v54 }
 0x234   :  { %677 = vrot.lane.b32.xlu1 %v1156_v38, %s939_s8 }
 0x26f   :  { %v541_v0 = vpop.f32.mrf.mxu2 }
 0x270   :  { %v542_v5 = vadd.f32 %v913_v58, %v541_v0 }
 0x272   :  { %546 = vmax.xlane.f32.xlu2 %v542_v5  ;;  %v576_v33 = vsel %vm574_vm6, %v542_v5, 0.0 }
 0x277   :  { %v543_v15 = vpop.f32.mrf.mxu2 }
 0x278   :  { %v544_v17 = vadd.f32 %v913_v58, %v543_v15  ;;  %v903_v58 = vpop.permute.xlu1 %902 }
 0x279   :  { %v905_v59 = vunpack.i.h.bf16 %v903_v58 }
 0x27a   :  { %548 = vmax.xlane.f32.xlu2 %v544_v17  ;;  %v577_v45 = vsel %vm575_vm11, %v544_v17, 0.0 }
 0x27b   :  { %v599_v60 = vmul.f32 %v905_v59, %v1161_v39 }
 0x282   :  { %578 = vadd.xlane.f32.xlu2 %v576_v33  ;;  %v618_v33 = vld [vmem:[#allocation2] sm:$0xff] }
 0x28a   :  { %606 = vadd.xlane.f32.xlu2 %v604_v43 }
 0x28e   :  { %v609_v4 = vpop.xlane.xlu1 %608 }
 0x28f   :  { %v613_v7 = vadd.f32 %v611_v3, %v609_v4  ;;  %v943_v4 = vmov 1  }
 0x291   :  { %v615_v12 = vsub.f32 %v613_v7, %v1161_v39  ;;  %v704_v7 = vshrl.u32 %v566_v13, 7 }
 0x292   :  { %580 = vadd.xlane.f32.xlu2 %v577_v45 }
 0x293   :  { %vm730_vm5 = vcmp.eq.s32.totalorder %v704_v7, 0 }
 0x2a6   :  { %v678_v45 = vpop.permute.xlu1 %677 }
 0x2e5   :  { %v547_v31 = vpop.xlane.xlu2 %546 }
 0x2e6   :  { %v550_v48 = vsub.f32 %v542_v5, %v547_v31  ;;  %v904_v5 = vunpack.i.l.bf16 %v903_v58 }
 0x2e8   :  { %v552_v55 = vmul.f32 1.442695, %v550_v48  ;;  %v598_v10 = vmul.f32 %v904_v5, %v1156_v38 }
 0x2ea   :  { %927 = vpow2.f32 %v552_v55 }
 0x2ed   :  { %v549_v49 = vpop.xlane.xlu2 %548 }
 0x2ee   :  { %v551_v37 = vsub.f32 %v544_v17, %v549_v49  ;;  %v617_v17 = vmul.f32 %v615_v12, %v615_v12 }
 0x2f0   :  { %v928_v56 = vpop.eup %927  ;;  %v554_v57 = vmul.f32 1.442695, %v551_v37 }
 0x2f1   :  { %556 = vadd.xlane.f32.xlu2 %v928_v56 }
 0x2f2   :  { %929 = vpow2.f32 %v554_v57 }
 0x2f5   :  { %v579_v62 = vpop.xlane.xlu2 %578 }
 0x2f8   :  { %v930_v27 = vpop.eup %929 }
 0x2f9   :  { %558 = vadd.xlane.f32.xlu2 %v930_v27 }
 0x2fd   :  { %v607_v63 = vpop.xlane.xlu2 %606 }
 0x2fe   :  { %v612_v22 = vadd.f32 %v611_v3, %v607_v63 }
 0x300   :  { %v614_v23 = vsub.f32 %v612_v22, %v1156_v38 }
 0x302   :  { %v616_v26 = vmul.f32 %v614_v23, %v614_v23 }
 0x304   :  { %v660_v32 = vmul.f32 %v655_v30, %v616_v26 }
 0x305   :  { %v581_v0 = vpop.xlane.xlu2 %580 }
 0x311   :  { %656 = vrot.lane.b32.xlu2 %v1161_v39, %s936_s16 }
 0x319   :  { %641 = vrot.lane.b32.xlu2 %v599_v60, %s936_s16 }
 0x364   :  { %v557_v2 = vpop.xlane.xlu2 %556 }
 0x365   :  { %931 = vlog2.f32 %v557_v2 }
 0x36b   :  { %v932_v6 = vpop.eup %931 }
 0x36c   :  { %v561_v61 = vmul.f32 0.6931472, %v932_v6  ;;  %v559_v8 = vpop.xlane.xlu2 %558 }
 0x36d   :  { %933 = vlog2.f32 %v559_v8 }
 0x36e   :  { %v564_v11 = vadd.f32 %v561_v61, %v547_v31 }
 0x370   :  { %v582_v14 = vsub.f32 %v564_v11, %v579_v62 }
 0x372   :  { %v620_v15 = vmul.f32 %v598_v10, %v582_v14 }
 0x373   :  { %v934_v16 = vpop.eup %933 }
 0x374   :  { %v563_v19 = vmul.f32 0.6931472, %v934_v16  ;;  %v657_v20 = vpop.permute.xlu2 %656  ;;  %624 = vrot.lane.b32.xlu0 %v620_v15, %s940_s21 }
 0x375   :  { %v661_v25 = vmul.f32 %v657_v20, %v617_v17 }
 0x376   :  { %v565_v21 = vadd.f32 %v563_v19, %v549_v49 }
 0x377   :  { %666 = vrot.lane.b32.xlu2 %v661_v25, %s939_s8 }
 0x378   :  { %v583_v1 = vsub.f32 %v565_v21, %v581_v0 }
 0x37a   :  { %v621_v24 = vmul.f32 %v599_v60, %v583_v1 }
 0x37c   :  { %626 = vrot.lane.b32.xlu0 %v621_v24, %s940_s21  ;;  %v642_v47 = vpop.permute.xlu2 %641 }
 0x384   :  { %639 = vrot.lane.b32.xlu0 %v598_v10, %s936_s16 }
 0x38c   :  { %664 = vrot.lane.b32.xlu0 %v660_v32, %s939_s8 }
 0x394   :  { %679 = vrot.lane.b32.xlu0 %v1161_v39, %s939_s8 }
 0x3d1   :  { %v667_v52 = vpop.permute.xlu2 %666 }
 0x3e6   :  { %v625_v38 = vpop.permute.xlu0 %624 }
 0x3e7   :  { %v630_v35 = vadd.f32 %v625_v38, %v618_v33 }
 0x3e9   :  { %633 = vst.msk [vmem:[#allocation2] sm:$0xff] %vm632_vm13, %v630_v35 }
 0x3ee   :  { %v627_v41 = vpop.permute.xlu0 %626 }
 0x3ef   :  { %v631_v9 = vadd.f32 %v627_v41, %v619_v36 }
 0x3f0   :  { %v635_v39 = vld [vmem:[#allocation2] sm:$0xff] }
 0x3f1   :  { %634 = vst.msk [vmem:[#allocation2 + $0x8] sm:$0xff] %vm632_vm13, %v631_v9 }
 0x3f6   :  { %v640_v43 = vpop.permute.xlu0 %639 }
 0x3f7   :  { %v645_v46 = vadd.f32 %v640_v43, %v635_v39 }
 0x3f8   :  { %v636_v28 = vld [vmem:[#allocation2 + $0x8] sm:$0xff] }
 0x3f9   :  { %v646_v44 = vadd.f32 %v642_v47, %v636_v28  ;;  %648 = vst.msk [vmem:[#allocation2] sm:$0xff] %vm647_vm14, %v645_v46 }
 0x3fb   :  { %649 = vst.msk [vmem:[#allocation2 + $0x8] sm:$0xff] %vm647_vm14, %v646_v44 }
 0x3fe   :  { %v665_v51 = vpop.permute.xlu0 %664 }
 0x400   :  { %v650_v50 = vld [vmem:[#allocation2] sm:$0xff] }
 0x401   :  { %v670_v34 = vadd.f32 %v665_v51, %v650_v50 }
 0x402   :  { %v651_v53 = vld [vmem:[#allocation2 + $0x8] sm:$0xff] }
 0x403   :  { %673 = vst.msk [vmem:[#allocation2] sm:$0xff] %vm672_vm15, %v670_v34  ;;  %v671_v54 = vadd.f32 %v667_v52, %v651_v53 }
 0x405   :  { %674 = vst.msk [vmem:[#allocation2 + $0x8] sm:$0xff] %vm672_vm15, %v671_v54 }
 0x406   :  { %v680_v48 = vpop.permute.xlu0 %679 }
 0x40a   :  { %v675_v31 = vld [vmem:[#allocation2] sm:$0xff] }
 0x40b   :  { %v683_v55 = vadd.f32 %v678_v45, %v675_v31 }
 0x40c   :  { %v676_v49 = vld [vmem:[#allocation2 + $0x8] sm:$0xff] }
 0x40d   :  { %686 = vst.msk [vmem:[#allocation2] sm:$0xff] %vm685_vm0, %v683_v55  ;;  %v684_v37 = vadd.f32 %v680_v48, %v676_v49 }
 0x40f   :  { %687 = vst.msk [vmem:[#allocation2 + $0x8] sm:$0xff] %vm685_vm0, %v684_v37 }
 0x414   :  { %v691_v56 = vld [vmem:[#allocation2] sm:$0xff] }
 0x415   :  { %v694_v27 = vsel %vm84_vm12, %v691_v56, 0.0 }
 0x416   :  { %v692_v57 = vld [vmem:[#allocation2 + $0x8] sm:$0xff] }
 0x417   :  { %v695_v58 = vsel %vm84_vm12, %v692_v57, 0.0 }
 0x418   :  { %v696_v59 = vadd.f32 %v695_v58, %v694_v27 }
 0x41a   :  { %v697_v60 = vrot.slane %v696_v59, 4 }
 0x41c   :  { %v698_v62 = vadd.f32 %v697_v60, %v696_v59 }
 0x41e   :  { %v699_v63 = vrot.slane %v698_v62, 2 }
 0x420   :  { %v700_v0 = vadd.f32 %v699_v63, %v698_v62 }
 0x422   :  { %v701_v2 = vrot.slane %v700_v0, 1 }
 0x424   :  { %v702_v3 = vadd.f32 %v701_v2, %v700_v0 }
 0x426   :  { %716 = vperm.xlu0 %907, %v702_v3   ;;  %711 = vperm.xlu2 %906, %v702_v3  }
 0x42e   :  { %908 = vset.pattern.permute.xlu2 %v943_v4  ;;  %910 = vset.pattern.permute.xlu0 %v935_v40 }
 0x42f   :  { %721 = vperm.xlu2 %908, %v702_v3  }
 0x437   :  { %909 = vset.pattern.permute.xlu2 %v935_v40 }
 0x438   :  { %726 = vperm.xlu2 %909, %v702_v3  }
 0x480   :  { %v712_v5 = vpop.permute.xlu2 %711 }
 0x481   :  { %v714_v61 = vsel %vm708_vm1, %v712_v5, 0.0 }
 0x489   :  { %v722_v6 = vpop.permute.xlu2 %721 }
 0x492   :  { %v727_v11 = vpop.permute.xlu2 %726 }
 0x498   :  { %v717_v8 = vpop.permute.xlu0 %716 }
 0x499   :  { %v719_v10 = vsel %vm707_vm2, %v717_v8, %v714_v61 }
 0x49a   :  { %v724_v12 = vsel %vm706_vm3, %v722_v6, %v719_v10 }
 0x49b   :  { %v729_v40 = vsel %vm705_vm4, %v727_v11, %v724_v12 }
 0x49c   :  { %v731_v14 = vsel %vm730_vm5, %v729_v40, 0.0 }
 0x49d   :  { %732 = vst [vmem:[%s1270_s10] sm:$0xff] %v731_v14 }

</bundles_post_ra>
